<compile_context>
chip_gen: v6e
topology: v6e:2x2x1
jax: 0.10.0
libtpu: 0.0.40
codegen_flags: <defaults>
</compile_context>

<pallas_src>
import math

import jax
import jax.numpy as jnp
from jax.experimental import pallas as pl
from jax.experimental.pallas import tpu as pltpu

HID = 128          # hidden width fixed by the module (all Linear(..., 128))
TARGET_DIM = 128   # noidata width (mlp2 = Linear(128,128)) and output width
N_HEADS = 4
HEAD_DIM = HID // N_HEADS

# indices into the stacked (9, 128, 128) bf16 weight array
_WP1, _WP2, _WM1, _WM2, _WMLP, _WO, _W1A, _W2, _PSEL = range(9)
# indices into the stacked (2, 128, 256) bf16 weight array
_WQB, _WKV = 0, 1
# indices into the stacked (12, 128) f32 bias/frequency array
_FREQ, _BP1, _BP2, _BM1, _BM2, _BMLP, _BQ, _BK, _BV, _BO, _B1, _B2 = range(12)


def _round_up(x, m):
    return (x + m - 1) // m * m


def _round_down(x, m):
    return (x // m) * m


def _timestep_freqs(dim=HID, max_period=10000.0):
    half = dim // 2
    return jnp.exp(-math.log(max_period)
                   * jnp.arange(half, dtype=jnp.float32) / half)


def _dynamics_kernel(t_ref, noi_ref, cond_ref, bias_ref,
                     w128_ref, w256_ref, vec_ref, out_ref):
    f32 = jnp.float32
    bf16 = jnp.bfloat16

    def vrow(i):
        return vec_ref[i:i + 1, :]                       # (1, 128) f32, static slice

    def mm128(a_bf, idx):
        # bf16 MXU matmul against one 128x128 slab of the weight stack, f32 accumulate.
        return jnp.dot(a_bf, w128_ref[idx], preferred_element_type=f32)

    def silu(x):
        return x * jax.nn.sigmoid(x)

    noi = noi_ref[...]                                   # (B, 128) f32
    t = t_ref[...]                                       # (B, 1)   f32
    B, hid = noi.shape
    cond2d = cond_ref[...]                               # (B*N, 128) bf16
    n_cond = cond2d.shape[0] // B

    # --- sinusoidal timestep embedding [cos(t*f) | sin(t*f)] at full 128-lane width.
    args = t * vrow(_FREQ)                               # (B, 128) (freqs duplicated per half)
    lane = jax.lax.broadcasted_iota(jnp.int32, (1, hid), 1)
    temb = jnp.where(lane < (hid // 2), jnp.cos(args), jnp.sin(args))

    # --- Proj(temb), mlp2(noidata), then target_hidden = self.mlp(sum).
    temb_h = mm128(silu(mm128(temb.astype(bf16), _WP1) + vrow(_BP1)).astype(bf16),
                   _WP2) + vrow(_BP2)
    noi_h = mm128(silu(mm128(noi.astype(bf16), _WM1) + vrow(_BM1)).astype(bf16),
                  _WM2) + vrow(_BM2)
    th = mm128((noi_h + temb_h).astype(bf16), _WMLP) + vrow(_BMLP)       # (B, 128)
    th_bf = th.astype(bf16)

    # --- fused q-projection | target_hidden contribution to the output MLP (256-wide MXU).
    q_h1 = jnp.dot(th_bf, w256_ref[_WQB], preferred_element_type=f32)    # (B, 256)
    q = q_h1[:, :hid] + vrow(_BQ)                                        # (B, 128)
    th_h1 = q_h1[:, hid:]                                                # (B, 128)

    # --- fused K/V projection over the condition.
    kv = jnp.dot(cond2d, w256_ref[_WKV], preferred_element_type=f32)     # (B*N, 256)
    k = kv[:, :hid] + vrow(_BK)
    v = kv[:, hid:] + vrow(_BV)

    # --- multi-head attention (query length 1): full-width q*k product, one 128x128
    # block-diagonal matmul ((sel @ sel.T) * inv_scale) gives the per-head energy
    # replicated across each 32-lane head block; softmax runs at full lane width and
    # the result is used directly as the per-lane attention weight.
    q_bf = q.astype(bf16)
    k_bf = k.astype(bf16)
    prod = (q_bf.reshape(B, 1, hid) * k_bf.reshape(B, n_cond, hid)).reshape(B * n_cond, hid)
    energy = mm128(prod, _PSEL).reshape(B, n_cond, hid) + bias_ref[...]  # additive mask
    emax = jnp.max(energy, axis=1, keepdims=True)                        # softmax over N
    p = jnp.exp(energy - emax)
    attn = p * pl.reciprocal(jnp.sum(p, axis=1, keepdims=True), approx=True)
    x = jnp.sum(attn * v.reshape(B, n_cond, hid), axis=1)                # (B, 128)

    target_cond = mm128(x.astype(bf16), _WO) + vrow(_BO)

    # --- output MLP on cat([target_cond, target_hidden]) without the 256-lane concat.
    h1 = silu(mm128(target_cond.astype(bf16), _W1A) + th_h1 + vrow(_B1))
    out = mm128(h1.astype(bf16), _W2) + vrow(_B2)                        # (B, 128)

    out_ref[...] = (noi - out).astype(out_ref.dtype)


def pack_params(params):
    """One-time packing: bf16 weight stacks (fused K/V and q|w1b), f32 bias stack,
    block-diagonal head-selector matrix P = (sel @ sel.T) * inv_scale, freq row."""
    bf = lambda w: jnp.asarray(w, jnp.bfloat16)
    f32 = lambda b: jnp.asarray(b, jnp.float32).reshape(-1)

    lanes = jnp.arange(HID) // HEAD_DIM
    same_head = (lanes[:, None] == lanes[None, :]).astype(jnp.float32)
    psel = (same_head * (float(HEAD_DIM) ** -0.5)).astype(jnp.bfloat16)   # (128, 128)

    w128 = jnp.stack([
        bf(params["wp1"]), bf(params["wp2"]),
        bf(params["wm1"]), bf(params["wm2"]),
        bf(params["wmlp"]), bf(params["wo"]),
        bf(params["w1"][:HID]), bf(params["w2"]), psel,
    ])                                                                    # (9, 128, 128)

    w256 = jnp.stack([
        bf(jnp.concatenate([params["wq"], params["w1"][HID:]], axis=1)),  # q | th->h1
        bf(jnp.concatenate([params["wk"], params["wv"]], axis=1)),        # k | v
    ])                                                                    # (2, 128, 256)

    freqs = _timestep_freqs()
    freq_ext = jnp.concatenate([freqs, freqs])                            # cos half | sin half
    vecs = jnp.stack([
        freq_ext,
        f32(params["bp1"]), f32(params["bp2"]),
        f32(params["bm1"]), f32(params["bm2"]),
        f32(params["bmlp"]), f32(params["bq"]),
        f32(params["bk"]), f32(params["bv"]),
        f32(params["bo"]), f32(params["b1"]), f32(params["b2"]),
    ]).astype(jnp.float32)                                                # (12, 128)

    return dict(w128=w128, w256=w256, vecs=vecs)


def prepare_condition(cond, mask_b11n):
    """Hoisted once-per-sampling-run prep (mirrors set_value): dense condition as a
    lane-aligned bf16 2-D slab and the boolean mask as an additive f32 bias."""
    bs, n_cond, hid = cond.shape
    cond2d_bf = cond.reshape(bs * n_cond, hid).astype(jnp.bfloat16)
    mask_bias = ((mask_b11n.reshape(bs, n_cond).astype(jnp.float32) - 1.0) * 1e10
                 ).reshape(bs, n_cond, 1)
    return cond2d_bf, mask_bias


def _pick_block_b(bs, n_cond):
    # Keep the cond block at <= ~4 MiB so double-buffering stays well under the 32 MiB
    # scoped VMEM limit on every generation (incl. v7x's 64 MiB physical VMEM).
    cap = max(16, _round_down((4 * 1024 * 1024) // (n_cond * HID * 2), 16))
    if bs >= 32:
        # <= bs/2 so the grid has >= 2 steps and both v7x TensorCores are used;
        # as large as possible to amortize the ~0.35 us per-grid-step overhead.
        return min(1024, cap, max(16, _round_down(bs // 2, 16)))
    return _round_up(max(bs, 8), 8)


def dynamics_t_samp_forward(noidata, t, cond2d_bf, mask_bias, packed, block_b=None):
    """Pallas forward for the sampling path (look != 0).

    cond2d_bf / mask_bias come from prepare_condition() (computed once per run).
    """
    bs, target_dim = noidata.shape
    n_cond = mask_bias.shape[1]
    assert target_dim == TARGET_DIM and cond2d_bf.shape == (bs * n_cond, HID)

    if block_b is None:
        block_b = _pick_block_b(bs, n_cond)
    else:
        block_b = _round_up(block_b, 8)

    t_col = jnp.broadcast_to(jnp.asarray(t, jnp.float32).reshape(-1, 1), (bs, 1))

    # Pad the batch up to a multiple of block_b (padded rows are zero; sliced off below).
    padded_bs = _round_up(bs, block_b)
    if padded_bs != bs:
        pad = padded_bs - bs
        t_col = jnp.pad(t_col, ((0, pad), (0, 0)))
        noidata_p = jnp.pad(noidata, ((0, pad), (0, 0)))
        cond2d_p = jnp.pad(cond2d_bf.reshape(bs, n_cond, HID),
                           ((0, pad), (0, 0), (0, 0))).reshape(padded_bs * n_cond, HID)
        mask_p = jnp.pad(mask_bias, ((0, pad), (0, 0), (0, 0)))
    else:
        noidata_p, cond2d_p, mask_p = noidata, cond2d_bf, mask_bias

    grid = (padded_bs // block_b,)

    in_specs = [
        pl.BlockSpec((block_b, 1), lambda b: (b, 0)),                      # t
        pl.BlockSpec((block_b, HID), lambda b: (b, 0)),                    # noidata
        pl.BlockSpec((block_b * n_cond, HID), lambda b: (b, 0)),           # cond (2-D)
        pl.BlockSpec((block_b, n_cond, 1), lambda b: (b, 0, 0)),           # mask bias
        pl.BlockSpec(packed["w128"].shape, lambda b: (0, 0, 0)),           # weight stack
        pl.BlockSpec(packed["w256"].shape, lambda b: (0, 0, 0)),           # fused q|w1b, k|v
        pl.BlockSpec(packed["vecs"].shape, lambda b: (0, 0)),              # biases + freqs
    ]

    out = pl.pallas_call(
        _dynamics_kernel,
        out_shape=jax.ShapeDtypeStruct((padded_bs, TARGET_DIM), jnp.float32),
        grid_spec=pltpu.PrefetchScalarGridSpec(
            num_scalar_prefetch=0,
            grid=grid,
            in_specs=in_specs,
            out_specs=pl.BlockSpec((block_b, TARGET_DIM), lambda b: (b, 0))),
        compiler_params=pltpu.CompilerParams(
            dimension_semantics=("parallel",),   # shards batch blocks over v7x's 2 TCs
            vmem_limit_bytes=32 << 20),
    )(t_col, noidata_p, cond2d_p, mask_p,
      packed["w128"], packed["w256"], packed["vecs"])

    return out[:bs] if padded_bs != bs else out


def init_params(key):
    """Deterministic synthetic parameters (shapes from the module __init__)."""
    ks = jax.random.split(key, 24)

    def lin(k, fan_in, fan_out):
        return jax.random.normal(k, (fan_in, fan_out), jnp.float32) / jnp.sqrt(fan_in)

    def bias(k, n):
        return jax.random.normal(k, (n,), jnp.float32) * 0.01

    p = {}
    p["wp1"], p["bp1"] = lin(ks[0], HID, HID), bias(ks[1], HID)      # Proj
    p["wp2"], p["bp2"] = lin(ks[2], HID, HID), bias(ks[3], HID)
    p["wm1"], p["bm1"] = lin(ks[4], HID, HID), bias(ks[5], HID)      # mlp2
    p["wm2"], p["bm2"] = lin(ks[6], HID, HID), bias(ks[7], HID)
    p["wmlp"], p["bmlp"] = lin(ks[8], HID, HID), bias(ks[9], HID)    # mlp
    p["wq"], p["bq"] = lin(ks[10], HID, HID), bias(ks[11], HID)      # attention
    p["wk"], p["bk"] = lin(ks[12], HID, HID), bias(ks[13], HID)
    p["wv"], p["bv"] = lin(ks[14], HID, HID), bias(ks[15], HID)
    p["wo"], p["bo"] = lin(ks[16], HID, HID), bias(ks[17], HID)
    p["w1"], p["b1"] = lin(ks[18], 2 * HID, HID), bias(ks[19], HID)  # out
    p["w2"], p["b2"] = lin(ks[20], HID, HID), bias(ks[21], HID)
    return p


def reference_forward(noidata, t, cond, mask_b11n, params, n_heads=N_HEADS):
    """Pure-JAX f32 reference replicating the PyTorch semantics (eval mode)."""
    bs = noidata.shape[0]
    n_cond = cond.shape[1]
    hd = HID // n_heads

    def silu(x):
        return x * jax.nn.sigmoid(x)

    t_vec = jnp.broadcast_to(jnp.asarray(t, jnp.float32).reshape(-1), (bs,))
    args = t_vec[:, None] * _timestep_freqs()[None, :]
    temb = jnp.concatenate([jnp.cos(args), jnp.sin(args)], axis=-1)

    temb = silu(temb @ params["wp1"] + params["bp1"]) @ params["wp2"] + params["bp2"]
    th0 = silu(noidata @ params["wm1"] + params["bm1"]) @ params["wm2"] + params["bm2"]
    target_hidden = (th0 + temb) @ params["wmlp"] + params["bmlp"]

    q = (target_hidden @ params["wq"] + params["bq"]).reshape(bs, 1, n_heads, hd).transpose(0, 2, 1, 3)
    k = (cond @ params["wk"] + params["bk"]).reshape(bs, n_cond, n_heads, hd).transpose(0, 2, 1, 3)
    v = (cond @ params["wv"] + params["bv"]).reshape(bs, n_cond, n_heads, hd).transpose(0, 2, 1, 3)
    energy = jnp.einsum("bhqd,bhkd->bhqk", q, k) / jnp.sqrt(jnp.float32(hd))
    energy = jnp.where(mask_b11n == 0, -1e10, energy)
    attn = jax.nn.softmax(energy, axis=-1)
    x = jnp.einsum("bhqk,bhkd->bhqd", attn, v)
    x = x.transpose(0, 2, 1, 3).reshape(bs, HID)
    target_cond = x @ params["wo"] + params["bo"]

    merged = jnp.concatenate([target_cond, target_hidden], axis=1)
    out = silu(merged @ params["w1"] + params["b1"]) @ params["w2"] + params["b2"]
    return noidata - out


if __name__ == "__main__":
    key = jax.random.PRNGKey(0)
    k_par, k_noi, k_cond, k_len, k_t = jax.random.split(key, 5)

    # SMALL demo shapes; scale bs to fill the MXU and both v7x TCs (block_b auto-tunes).
    bs, n_cond = 8, 8
    params = init_params(k_par)
    packed = pack_params(params)          # pack once per sampling run, not per step

    noidata = jax.random.normal(k_noi, (bs, TARGET_DIM), jnp.float32)
    cond = jax.random.normal(k_cond, (bs, n_cond, HID), jnp.float32)
    lengths = jax.random.randint(k_len, (bs,), 3, n_cond + 1)
    mask = jnp.arange(n_cond)[None, :] < lengths[:, None]            # (bs, N) bool
    mask_b11n = mask[:, None, None, :]                               # == self.ma
    t = jax.random.uniform(k_t, (bs,), jnp.float32, 0.0, 1000.0)     # diffusion timesteps

    # Hoisted once-per-run condition prep (mirrors set_value()).
    cond2d_bf, mask_bias = prepare_condition(cond, mask_b11n)

    err = dynamics_t_samp_forward(noidata, t, cond2d_bf, mask_bias, packed)
    err = jax.block_until_ready(err)

    ref = reference_forward(noidata, t, cond, mask_b11n, params)
    assert err.shape == (bs, TARGET_DIM)
    max_abs = float(jnp.max(jnp.abs(err - ref)))
    # bf16 MXU matmuls vs. the f32 reference -> loosened tolerance.
    assert jnp.allclose(err, ref, atol=5e-2, rtol=5e-2), f"max abs diff {max_abs}"
    print("KERNEL_OK")
</pallas_src>

<mosaic_0001>
module attributes {stable_mosaic.version = 11 : i64} {
  func.func @_dynamics_kernel(%arg0: i32, %arg1: memref<8x1xf32, #tpu.memory_space<vmem>>, %arg2: memref<8x128xf32, #tpu.memory_space<vmem>>, %arg3: memref<64x128xbf16, #tpu.memory_space<vmem>>, %arg4: memref<8x8x1xf32, #tpu.memory_space<vmem>>, %arg5: memref<9x128x128xbf16, #tpu.memory_space<vmem>>, %arg6: memref<2x128x256xbf16, #tpu.memory_space<vmem>>, %arg7: memref<12x128xf32, #tpu.memory_space<vmem>>, %arg8: memref<8x128xf32, #tpu.memory_space<vmem>>) attributes {dimension_semantics = [#tpu.dimension_semantics<parallel>], iteration_bounds = array<i64: 1>, scalar_prefetch = 0 : i64, scratch_operands = 0 : i64, tpu.core_type = #tpu.core_type<tc>, window_params = [{transform_indices = @transform_0, window_bounds = array<i64: 8, 1>}, {transform_indices = @transform_1, window_bounds = array<i64: 8, 128>}, {transform_indices = @transform_2, window_bounds = array<i64: 64, 128>}, {transform_indices = @transform_3, window_bounds = array<i64: 8, 8, 1>}, {pipeline_mode = #tpu.pipeline_mode<synchronous>, transform_indices = @transform_4, window_bounds = array<i64: 9, 128, 128>}, {pipeline_mode = #tpu.pipeline_mode<synchronous>, transform_indices = @transform_5, window_bounds = array<i64: 2, 128, 256>}, {pipeline_mode = #tpu.pipeline_mode<synchronous>, transform_indices = @transform_6, window_bounds = array<i64: 12, 128>}, {transform_indices = @transform_7, window_bounds = array<i64: 8, 128>}]} {
    %c0 = arith.constant 0 : index
    %c0_0 = arith.constant 0 : index
    %0 = vector.load %arg2[%c0, %c0_0] : memref<8x128xf32, #tpu.memory_space<vmem>>, vector<8x128xf32>
    %c0_1 = arith.constant 0 : index
    %c0_2 = arith.constant 0 : index
    %1 = vector.load %arg1[%c0_1, %c0_2] : memref<8x1xf32, #tpu.memory_space<vmem>>, vector<8x1xf32>
    %c0_3 = arith.constant 0 : index
    %c0_4 = arith.constant 0 : index
    %2 = vector.load %arg3[%c0_3, %c0_4] : memref<64x128xbf16, #tpu.memory_space<vmem>>, vector<64x128xbf16>
    %c0_5 = arith.constant 0 : index
    %c0_6 = arith.constant 0 : index
    %3 = vector.load %arg7[%c0_5, %c0_6] : memref<12x128xf32, #tpu.memory_space<vmem>>, vector<1x128xf32>
    %4 = vector.broadcast %1 : vector<8x1xf32> to vector<8x128xf32>
    %5 = vector.broadcast %3 : vector<1x128xf32> to vector<8x128xf32>
    %6 = arith.mulf %4, %5 : vector<8x128xf32>
    %7 = tpu.iota {dimensions = array<i32: 1>} : vector<1x128xi32>
    %c64_i32 = arith.constant 64 : i32
    %8 = vector.broadcast %c64_i32 : i32 to vector<1x128xi32>
    %9 = arith.cmpi slt, %7, %8 : vector<1x128xi32>
    %10 = math.cos %6 : vector<8x128xf32>
    %11 = math.sin %6 : vector<8x128xf32>
    %12 = vector.shape_cast %9 : vector<1x128xi1> to vector<1x128xi1>
    %13 = vector.broadcast %12 : vector<1x128xi1> to vector<8x128xi1>
    %14 = arith.select %13, %10, %11 : vector<8x128xi1>, vector<8x128xf32>
    %15 = arith.truncf %14 : vector<8x128xf32> to vector<8x128xbf16>
    %c0_7 = arith.constant 0 : index
    %c0_8 = arith.constant 0 : index
    %c0_9 = arith.constant 0 : index
    %16 = vector.load %arg5[%c0_7, %c0_8, %c0_9] : memref<9x128x128xbf16, #tpu.memory_space<vmem>>, vector<1x128x128xbf16>
    %17 = vector.shape_cast %16 : vector<1x128x128xbf16> to vector<128x128xbf16>
    %cst = arith.constant dense<0.000000e+00> : vector<8x128xf32>
    %18 = tpu.matmul %15, %17, %cst {dimension_numbers = #tpu.dot_dimension_numbers<[1], [0], [0], [1], [0, 0, 1, 1], [], []>} : vector<8x128xbf16>, vector<128x128xbf16>, vector<8x128xf32> -> vector<8x128xf32>
    %c1 = arith.constant 1 : index
    %c0_10 = arith.constant 0 : index
    %19 = vector.load %arg7[%c1, %c0_10] : memref<12x128xf32, #tpu.memory_space<vmem>>, vector<1x128xf32>
    %20 = vector.broadcast %19 : vector<1x128xf32> to vector<8x128xf32>
    %21 = arith.addf %18, %20 : vector<8x128xf32>
    %22 = arith.negf %21 : vector<8x128xf32>
    %23 = math.exp %22 : vector<8x128xf32>
    %cst_11 = arith.constant 1.000000e+00 : f32
    %24 = vector.broadcast %cst_11 : f32 to vector<8x128xf32>
    %25 = arith.addf %24, %23 : vector<8x128xf32>
    %26 = arith.divf %24, %25 : vector<8x128xf32>
    %27 = arith.mulf %21, %26 : vector<8x128xf32>
    %28 = arith.truncf %27 : vector<8x128xf32> to vector<8x128xbf16>
    %c1_12 = arith.constant 1 : index
    %c0_13 = arith.constant 0 : index
    %c0_14 = arith.constant 0 : index
    %29 = vector.load %arg5[%c1_12, %c0_13, %c0_14] : memref<9x128x128xbf16, #tpu.memory_space<vmem>>, vector<1x128x128xbf16>
    %30 = vector.shape_cast %29 : vector<1x128x128xbf16> to vector<128x128xbf16>
    %cst_15 = arith.constant dense<0.000000e+00> : vector<8x128xf32>
    %31 = tpu.matmul %28, %30, %cst_15 {dimension_numbers = #tpu.dot_dimension_numbers<[1], [0], [0], [1], [0, 0, 1, 1], [], []>} : vector<8x128xbf16>, vector<128x128xbf16>, vector<8x128xf32> -> vector<8x128xf32>
    %c2 = arith.constant 2 : index
    %c0_16 = arith.constant 0 : index
    %32 = vector.load %arg7[%c2, %c0_16] : memref<12x128xf32, #tpu.memory_space<vmem>>, vector<1x128xf32>
    %33 = vector.broadcast %32 : vector<1x128xf32> to vector<8x128xf32>
    %34 = arith.addf %31, %33 : vector<8x128xf32>
    %35 = arith.truncf %0 : vector<8x128xf32> to vector<8x128xbf16>
    %c2_17 = arith.constant 2 : index
    %c0_18 = arith.constant 0 : index
    %c0_19 = arith.constant 0 : index
    %36 = vector.load %arg5[%c2_17, %c0_18, %c0_19] : memref<9x128x128xbf16, #tpu.memory_space<vmem>>, vector<1x128x128xbf16>
    %37 = vector.shape_cast %36 : vector<1x128x128xbf16> to vector<128x128xbf16>
    %cst_20 = arith.constant dense<0.000000e+00> : vector<8x128xf32>
    %38 = tpu.matmul %35, %37, %cst_20 {dimension_numbers = #tpu.dot_dimension_numbers<[1], [0], [0], [1], [0, 0, 1, 1], [], []>} : vector<8x128xbf16>, vector<128x128xbf16>, vector<8x128xf32> -> vector<8x128xf32>
    %c3 = arith.constant 3 : index
    %c0_21 = arith.constant 0 : index
    %39 = vector.load %arg7[%c3, %c0_21] : memref<12x128xf32, #tpu.memory_space<vmem>>, vector<1x128xf32>
    %40 = vector.broadcast %39 : vector<1x128xf32> to vector<8x128xf32>
    %41 = arith.addf %38, %40 : vector<8x128xf32>
    %42 = arith.negf %41 : vector<8x128xf32>
    %43 = math.exp %42 : vector<8x128xf32>
    %cst_22 = arith.constant 1.000000e+00 : f32
    %44 = vector.broadcast %cst_22 : f32 to vector<8x128xf32>
    %45 = arith.addf %44, %43 : vector<8x128xf32>
    %46 = arith.divf %44, %45 : vector<8x128xf32>
    %47 = arith.mulf %41, %46 : vector<8x128xf32>
    %48 = arith.truncf %47 : vector<8x128xf32> to vector<8x128xbf16>
    %c3_23 = arith.constant 3 : index
    %c0_24 = arith.constant 0 : index
    %c0_25 = arith.constant 0 : index
    %49 = vector.load %arg5[%c3_23, %c0_24, %c0_25] : memref<9x128x128xbf16, #tpu.memory_space<vmem>>, vector<1x128x128xbf16>
    %50 = vector.shape_cast %49 : vector<1x128x128xbf16> to vector<128x128xbf16>
    %cst_26 = arith.constant dense<0.000000e+00> : vector<8x128xf32>
    %51 = tpu.matmul %48, %50, %cst_26 {dimension_numbers = #tpu.dot_dimension_numbers<[1], [0], [0], [1], [0, 0, 1, 1], [], []>} : vector<8x128xbf16>, vector<128x128xbf16>, vector<8x128xf32> -> vector<8x128xf32>
    %c4 = arith.constant 4 : index
    %c0_27 = arith.constant 0 : index
    %52 = vector.load %arg7[%c4, %c0_27] : memref<12x128xf32, #tpu.memory_space<vmem>>, vector<1x128xf32>
    %53 = vector.broadcast %52 : vector<1x128xf32> to vector<8x128xf32>
    %54 = arith.addf %51, %53 : vector<8x128xf32>
    %55 = arith.addf %54, %34 : vector<8x128xf32>
    %56 = arith.truncf %55 : vector<8x128xf32> to vector<8x128xbf16>
    %c4_28 = arith.constant 4 : index
    %c0_29 = arith.constant 0 : index
    %c0_30 = arith.constant 0 : index
    %57 = vector.load %arg5[%c4_28, %c0_29, %c0_30] : memref<9x128x128xbf16, #tpu.memory_space<vmem>>, vector<1x128x128xbf16>
    %58 = vector.shape_cast %57 : vector<1x128x128xbf16> to vector<128x128xbf16>
    %cst_31 = arith.constant dense<0.000000e+00> : vector<8x128xf32>
    %59 = tpu.matmul %56, %58, %cst_31 {dimension_numbers = #tpu.dot_dimension_numbers<[1], [0], [0], [1], [0, 0, 1, 1], [], []>} : vector<8x128xbf16>, vector<128x128xbf16>, vector<8x128xf32> -> vector<8x128xf32>
    %c5 = arith.constant 5 : index
    %c0_32 = arith.constant 0 : index
    %60 = vector.load %arg7[%c5, %c0_32] : memref<12x128xf32, #tpu.memory_space<vmem>>, vector<1x128xf32>
    %61 = vector.broadcast %60 : vector<1x128xf32> to vector<8x128xf32>
    %62 = arith.addf %59, %61 : vector<8x128xf32>
    %63 = arith.truncf %62 : vector<8x128xf32> to vector<8x128xbf16>
    %c0_33 = arith.constant 0 : index
    %c0_34 = arith.constant 0 : index
    %c0_35 = arith.constant 0 : index
    %64 = vector.load %arg6[%c0_33, %c0_34, %c0_35] : memref<2x128x256xbf16, #tpu.memory_space<vmem>>, vector<1x128x256xbf16>
    %65 = vector.shape_cast %64 : vector<1x128x256xbf16> to vector<128x256xbf16>
    %cst_36 = arith.constant dense<0.000000e+00> : vector<8x256xf32>
    %66 = tpu.matmul %63, %65, %cst_36 {dimension_numbers = #tpu.dot_dimension_numbers<[1], [0], [0], [1], [0, 0, 1, 1], [], []>} : vector<8x128xbf16>, vector<128x256xbf16>, vector<8x256xf32> -> vector<8x256xf32>
    %67 = vector.extract_strided_slice %66 {offsets = [0, 0], sizes = [8, 128], strides = [1, 1]} : vector<8x256xf32> to vector<8x128xf32>
    %c6 = arith.constant 6 : index
    %c0_37 = arith.constant 0 : index
    %68 = vector.load %arg7[%c6, %c0_37] : memref<12x128xf32, #tpu.memory_space<vmem>>, vector<1x128xf32>
    %69 = vector.broadcast %68 : vector<1x128xf32> to vector<8x128xf32>
    %70 = arith.addf %67, %69 : vector<8x128xf32>
    %71 = vector.extract_strided_slice %66 {offsets = [0, 128], sizes = [8, 128], strides = [1, 1]} : vector<8x256xf32> to vector<8x128xf32>
    %c1_38 = arith.constant 1 : index
    %c0_39 = arith.constant 0 : index
    %c0_40 = arith.constant 0 : index
    %72 = vector.load %arg6[%c1_38, %c0_39, %c0_40] : memref<2x128x256xbf16, #tpu.memory_space<vmem>>, vector<1x128x256xbf16>
    %73 = vector.shape_cast %72 : vector<1x128x256xbf16> to vector<128x256xbf16>
    %cst_41 = arith.constant dense<0.000000e+00> : vector<64x256xf32>
    %74 = tpu.matmul %2, %73, %cst_41 {dimension_numbers = #tpu.dot_dimension_numbers<[1], [0], [0], [1], [0, 0, 1, 1], [], []>} : vector<64x128xbf16>, vector<128x256xbf16>, vector<64x256xf32> -> vector<64x256xf32>
    %75 = vector.extract_strided_slice %74 {offsets = [0, 0], sizes = [64, 128], strides = [1, 1]} : vector<64x256xf32> to vector<64x128xf32>
    %c7 = arith.constant 7 : index
    %c0_42 = arith.constant 0 : index
    %76 = vector.load %arg7[%c7, %c0_42] : memref<12x128xf32, #tpu.memory_space<vmem>>, vector<1x128xf32>
    %77 = vector.broadcast %76 : vector<1x128xf32> to vector<64x128xf32>
    %78 = arith.addf %75, %77 : vector<64x128xf32>
    %79 = vector.extract_strided_slice %74 {offsets = [0, 128], sizes = [64, 128], strides = [1, 1]} : vector<64x256xf32> to vector<64x128xf32>
    %c8 = arith.constant 8 : index
    %c0_43 = arith.constant 0 : index
    %80 = vector.load %arg7[%c8, %c0_43] : memref<12x128xf32, #tpu.memory_space<vmem>>, vector<1x128xf32>
    %81 = vector.broadcast %80 : vector<1x128xf32> to vector<64x128xf32>
    %82 = arith.addf %79, %81 : vector<64x128xf32>
    %83 = arith.truncf %70 : vector<8x128xf32> to vector<8x128xbf16>
    %84 = arith.truncf %78 : vector<64x128xf32> to vector<64x128xbf16>
    %85 = vector.shape_cast %83 : vector<8x128xbf16> to vector<8x1x128xbf16>
    %86 = vector.shape_cast %84 : vector<64x128xbf16> to vector<8x8x128xbf16>
    %87 = vector.broadcast %85 : vector<8x1x128xbf16> to vector<8x8x128xbf16>
    %88 = arith.mulf %87, %86 : vector<8x8x128xbf16>
    %89 = vector.shape_cast %88 : vector<8x8x128xbf16> to vector<64x128xbf16>
    %c8_44 = arith.constant 8 : index
    %c0_45 = arith.constant 0 : index
    %c0_46 = arith.constant 0 : index
    %90 = vector.load %arg5[%c8_44, %c0_45, %c0_46] : memref<9x128x128xbf16, #tpu.memory_space<vmem>>, vector<1x128x128xbf16>
    %91 = vector.shape_cast %90 : vector<1x128x128xbf16> to vector<128x128xbf16>
    %cst_47 = arith.constant dense<0.000000e+00> : vector<64x128xf32>
    %92 = tpu.matmul %89, %91, %cst_47 {dimension_numbers = #tpu.dot_dimension_numbers<[1], [0], [0], [1], [0, 0, 1, 1], [], []>} : vector<64x128xbf16>, vector<128x128xbf16>, vector<64x128xf32> -> vector<64x128xf32>
    %93 = vector.shape_cast %92 : vector<64x128xf32> to vector<8x8x128xf32>
    %c0_48 = arith.constant 0 : index
    %c0_49 = arith.constant 0 : index
    %c0_50 = arith.constant 0 : index
    %94 = vector.load %arg4[%c0_48, %c0_49, %c0_50] : memref<8x8x1xf32, #tpu.memory_space<vmem>>, vector<8x8x1xf32>
    %95 = vector.broadcast %94 : vector<8x8x1xf32> to vector<8x8x128xf32>
    %96 = arith.addf %93, %95 : vector<8x8x128xf32>
    %cst_51 = arith.constant dense<0xFF800000> : vector<8x128xf32>
    %97 = vector.multi_reduction <maximumf>, %96, %cst_51 [1] : vector<8x8x128xf32> to vector<8x128xf32>
    %98 = vector.shape_cast %97 : vector<8x128xf32> to vector<8x1x128xf32>
    %99 = vector.broadcast %98 : vector<8x1x128xf32> to vector<8x8x128xf32>
    %100 = arith.subf %96, %99 : vector<8x8x128xf32>
    %101 = math.exp %100 : vector<8x8x128xf32>
    %cst_52 = arith.constant dense<0.000000e+00> : vector<8x128xf32>
    %102 = vector.multi_reduction <add>, %101, %cst_52 [1] : vector<8x8x128xf32> to vector<8x128xf32>
    %103 = vector.shape_cast %102 : vector<8x128xf32> to vector<8x1x128xf32>
    %104 = tpu.reciprocal %103 {approx = true} : vector<8x1x128xf32> -> vector<8x1x128xf32>
    %105 = vector.broadcast %104 : vector<8x1x128xf32> to vector<8x8x128xf32>
    %106 = arith.mulf %101, %105 : vector<8x8x128xf32>
    %107 = vector.shape_cast %82 : vector<64x128xf32> to vector<8x8x128xf32>
    %108 = arith.mulf %106, %107 : vector<8x8x128xf32>
    %cst_53 = arith.constant dense<0.000000e+00> : vector<8x128xf32>
    %109 = vector.multi_reduction <add>, %108, %cst_53 [1] : vector<8x8x128xf32> to vector<8x128xf32>
    %110 = arith.truncf %109 : vector<8x128xf32> to vector<8x128xbf16>
    %c5_54 = arith.constant 5 : index
    %c0_55 = arith.constant 0 : index
    %c0_56 = arith.constant 0 : index
    %111 = vector.load %arg5[%c5_54, %c0_55, %c0_56] : memref<9x128x128xbf16, #tpu.memory_space<vmem>>, vector<1x128x128xbf16>
    %112 = vector.shape_cast %111 : vector<1x128x128xbf16> to vector<128x128xbf16>
    %cst_57 = arith.constant dense<0.000000e+00> : vector<8x128xf32>
    %113 = tpu.matmul %110, %112, %cst_57 {dimension_numbers = #tpu.dot_dimension_numbers<[1], [0], [0], [1], [0, 0, 1, 1], [], []>} : vector<8x128xbf16>, vector<128x128xbf16>, vector<8x128xf32> -> vector<8x128xf32>
    %c9 = arith.constant 9 : index
    %c0_58 = arith.constant 0 : index
    %114 = vector.load %arg7[%c9, %c0_58] : memref<12x128xf32, #tpu.memory_space<vmem>>, vector<1x128xf32>
    %115 = vector.broadcast %114 : vector<1x128xf32> to vector<8x128xf32>
    %116 = arith.addf %113, %115 : vector<8x128xf32>
    %117 = arith.truncf %116 : vector<8x128xf32> to vector<8x128xbf16>
    %c6_59 = arith.constant 6 : index
    %c0_60 = arith.constant 0 : index
    %c0_61 = arith.constant 0 : index
    %118 = vector.load %arg5[%c6_59, %c0_60, %c0_61] : memref<9x128x128xbf16, #tpu.memory_space<vmem>>, vector<1x128x128xbf16>
    %119 = vector.shape_cast %118 : vector<1x128x128xbf16> to vector<128x128xbf16>
    %cst_62 = arith.constant dense<0.000000e+00> : vector<8x128xf32>
    %120 = tpu.matmul %117, %119, %cst_62 {dimension_numbers = #tpu.dot_dimension_numbers<[1], [0], [0], [1], [0, 0, 1, 1], [], []>} : vector<8x128xbf16>, vector<128x128xbf16>, vector<8x128xf32> -> vector<8x128xf32>
    %121 = arith.addf %120, %71 : vector<8x128xf32>
    %c10 = arith.constant 10 : index
    %c0_63 = arith.constant 0 : index
    %122 = vector.load %arg7[%c10, %c0_63] : memref<12x128xf32, #tpu.memory_space<vmem>>, vector<1x128xf32>
    %123 = vector.broadcast %122 : vector<1x128xf32> to vector<8x128xf32>
    %124 = arith.addf %121, %123 : vector<8x128xf32>
    %125 = arith.negf %124 : vector<8x128xf32>
    %126 = math.exp %125 : vector<8x128xf32>
    %cst_64 = arith.constant 1.000000e+00 : f32
    %127 = vector.broadcast %cst_64 : f32 to vector<8x128xf32>
    %128 = arith.addf %127, %126 : vector<8x128xf32>
    %129 = arith.divf %127, %128 : vector<8x128xf32>
    %130 = arith.mulf %124, %129 : vector<8x128xf32>
    %131 = arith.truncf %130 : vector<8x128xf32> to vector<8x128xbf16>
    %c7_65 = arith.constant 7 : index
    %c0_66 = arith.constant 0 : index
    %c0_67 = arith.constant 0 : index
    %132 = vector.load %arg5[%c7_65, %c0_66, %c0_67] : memref<9x128x128xbf16, #tpu.memory_space<vmem>>, vector<1x128x128xbf16>
    %133 = vector.shape_cast %132 : vector<1x128x128xbf16> to vector<128x128xbf16>
    %cst_68 = arith.constant dense<0.000000e+00> : vector<8x128xf32>
    %134 = tpu.matmul %131, %133, %cst_68 {dimension_numbers = #tpu.dot_dimension_numbers<[1], [0], [0], [1], [0, 0, 1, 1], [], []>} : vector<8x128xbf16>, vector<128x128xbf16>, vector<8x128xf32> -> vector<8x128xf32>
    %c11 = arith.constant 11 : index
    %c0_69 = arith.constant 0 : index
    %135 = vector.load %arg7[%c11, %c0_69] : memref<12x128xf32, #tpu.memory_space<vmem>>, vector<1x128xf32>
    %136 = vector.broadcast %135 : vector<1x128xf32> to vector<8x128xf32>
    %137 = arith.addf %134, %136 : vector<8x128xf32>
    %138 = arith.subf %0, %137 : vector<8x128xf32>
    %c0_70 = arith.constant 0 : index
    %c0_71 = arith.constant 0 : index
    %139 = vector.load %arg8[%c0_70, %c0_71] : memref<8x128xf32, #tpu.memory_space<vmem>>, vector<8x128xf32>
    tpu.vector_store %arg8[%c0_70, %c0_71], %138 {strides = array<i32>} : memref<8x128xf32, #tpu.memory_space<vmem>>, vector<8x128xf32>,
    return
  }
  func.func @transform_0(%arg0: i32) -> (i32, i32) {
    %c0_i32 = arith.constant 0 : i32
    %c0_i32_0 = arith.constant 0 : i32
    return %arg0, %c0_i32 : i32, i32
  }
  func.func @transform_1(%arg0: i32) -> (i32, i32) {
    %c0_i32 = arith.constant 0 : i32
    %c0_i32_0 = arith.constant 0 : i32
    return %arg0, %c0_i32 : i32, i32
  }
  func.func @transform_2(%arg0: i32) -> (i32, i32) {
    %c0_i32 = arith.constant 0 : i32
    %c0_i32_0 = arith.constant 0 : i32
    return %arg0, %c0_i32 : i32, i32
  }
  func.func @transform_3(%arg0: i32) -> (i32, i32, i32) {
    %c0_i32 = arith.constant 0 : i32
    %c0_i32_0 = arith.constant 0 : i32
    %c0_i32_1 = arith.constant 0 : i32
    return %arg0, %c0_i32, %c0_i32_0 : i32, i32, i32
  }
  func.func @transform_4(%arg0: i32) -> (i32, i32, i32) {
    %c0_i32 = arith.constant 0 : i32
    %c0_i32_0 = arith.constant 0 : i32
    %c0_i32_1 = arith.constant 0 : i32
    %c0_i32_2 = arith.constant 0 : i32
    return %c0_i32, %c0_i32_0, %c0_i32_1 : i32, i32, i32
  }
  func.func @transform_5(%arg0: i32) -> (i32, i32, i32) {
    %c0_i32 = arith.constant 0 : i32
    %c0_i32_0 = arith.constant 0 : i32
    %c0_i32_1 = arith.constant 0 : i32
    %c0_i32_2 = arith.constant 0 : i32
    return %c0_i32, %c0_i32_0, %c0_i32_1 : i32, i32, i32
  }
  func.func @transform_6(%arg0: i32) -> (i32, i32) {
    %c0_i32 = arith.constant 0 : i32
    %c0_i32_0 = arith.constant 0 : i32
    %c0_i32_1 = arith.constant 0 : i32
    return %c0_i32, %c0_i32_0 : i32, i32
  }
  func.func @transform_7(%arg0: i32) -> (i32, i32) {
    %c0_i32 = arith.constant 0 : i32
    %c0_i32_0 = arith.constant 0 : i32
    return %arg0, %c0_i32 : i32, i32
  }
}

</mosaic_0001>

<bundles_post_ra>
// kernel: tpu_custom_call.1
= control target key start
LH: loop header
LB: loop body
LE: loop exit
PB: predicated region body
PF: predicated region fallthrough
CT: control target
= control target key end

     0   :  { %12 = vsyncpa [#allocation3], 0  ;;  %s3218_s0 = inlined_call_operand.vmem [shape: f32[8,1], index: 0, kind: input, shape index: {}]   ;;  %s3219_s1 = inlined_call_operand.vmem [shape: f32[8,128], index: 1, kind: input, shape index: {}]   ;;  %s3220_s2 = inlined_call_operand.vmem [shape: bf16[64,128], index: 2, kind: input, shape index: {}]   ;;  %s3221_s3 = inlined_call_operand.vmem [shape: f32[8,8,1], index: 3, kind: input, shape index: {}]   ;;  %s3222_s4 = inlined_call_operand.hbm [shape: bf16[9,128,128], index: 4, kind: input, shape index: {}]   ;;  %s3223_s5 = inlined_call_operand.hbm [shape: bf16[2,128,256], index: 5, kind: input, shape index: {}]   ;;  %s3224_s6 = inlined_call_operand.vmem [shape: f32[12,128], index: 6, kind: input, shape index: {}]   ;;  %s3225_s7 = inlined_call_operand.hbm [shape: f32[8,128], index: 7, kind: output, shape index: {}]  }
   0x1   :  { %13 = vsyncpa [#allocation6], 0 }
   0x2   :  { %14 = vsyncpa [#allocation4], 0  ;;  %s2878_s24 = smov [#allocation2]  }
   0x3   :  { %s28_s25 = sshll.u32 %s2878_s24, 4  ;;  %s29_s25 = int_to_ptr.vmem [resolvable:$true] %s28_s25 }
   0x4   :  { %s2820_s26 = scalar_lea.vmem %s29_s25, 9216  ;;  %p2825_p1 = scmp.lt.s32.totalorder %s29_s25, %s29_s25 }
   0x5   :  { %p2821_p0 = scmp.ne.s32.totalorder %s29_s25, %s2820_s26  ;;  %p2826_p2 = scmp.lt.s32.totalorder %s2820_s26, %s2820_s26 }
   0x7   :  { %p2827_p3 = por %p2826_p2, %p2825_p1 }
   0x9   :  { %p2828_p4 = pnand %p2827_p3, %p2821_p0 }
   0xb   :  { %2831 = shalt.err (!%p2828_p4)
}
   0xc   :  { %s2879_s27 = smov 64   ;;  %s2880_s28 = smov 4  }
   0xd   :  { %34 = dma.hbm_to_vmem [thread:$0]  %s3222_s4, 9216, %s29_s25, [#allocation3], %s2879_s27, %s2879_s27, %s2880_s28  }
   0xe   :  { %s2881_s8 = smov [#allocation5]  }
   0xf   :  { %s40_s9 = sshll.u32 %s2881_s8, 4  ;;  %s41_s9 = int_to_ptr.vmem [resolvable:$true] %s40_s9 }
  0x10   :  { %s2840_s10 = scalar_lea.vmem %s41_s9, 4096  ;;  %p2845_p6 = scmp.lt.s32.totalorder %s41_s9, %s41_s9 }
  0x11   :  { %p2841_p5 = scmp.ne.s32.totalorder %s41_s9, %s2840_s10  ;;  %p2846_p7 = scmp.lt.s32.totalorder %s2840_s10, %s2840_s10 }
  0x13   :  { %p2847_p8 = por %p2846_p7, %p2845_p6 }
  0x15   :  { %p2848_p9 = pnand %p2847_p8, %p2841_p5 }
  0x17   :  { %2851 = shalt.err (!%p2848_p9)
}
  0x18   :  { %s2882_s11 = smov 128   ;;  %s2883_s12 = smov 8  }
  0x19   :  { %46 = dma.hbm_to_vmem [thread:$0]  %s3223_s5, 4096, %s41_s9, [#allocation6], %s2882_s11, %s2882_s11, %s2883_s12  }
  0x1a   :  { %2872 = dma.done.wait [#allocation3], 9216  }
  0x1b   :  { %2873 = vsyncadd [#allocation3], 4294958080 }
  0x1c   :  { %2874 = dma.done.wait [#allocation6], 4096  }
  0x1d   :  { %2875 = vsyncadd [#allocation6], 4294963200  ;;  %v2884_v0 = vmov 0   ;;  %v57_v1 = vld [vmem:[%s3218_s0] sm:$0xff]  ;;  %v1550_v3 = vld [vmem:[%s3221_s3 + $0x18] sm:$0xff]  ;;  %v2885_v7 = vmov 0.0  }
  0x1e   :  { %2637 = vset.pattern.permute.xlu0 %v2884_v0  ;;  %2638 = vset.pattern.permute.xlu1 %v2884_v0  ;;  %v1547_v2 = vld [vmem:[%s3221_s3] sm:$0xff]  ;;  %v1552_v4 = vld [vmem:[%s3221_s3 + $0x28] sm:$0xff]  ;;  %v1554_v5 = vld [vmem:[%s3221_s3 + $0x38] sm:$0xff]  ;;  %vm2886_vm0 = vmmov 0   ;;  %v2887_v28 = vmov 683565275  }
  0x1f   :  { %69 = vperm.xlu0 %2637, %v57_v1   ;;  %v2639_v6 = vld [vmem:[#allocation2 + $0x38] sm:$0xff]   ;;  %2432 = vmatprep.subr.bf16.mxu0 %v2885_v7  ;;  %v2640_v8 = vld [vmem:[#allocation2 + $0x30] sm:$0xff]   ;;  %v2641_v9 = vld [vmem:[#allocation2 + $0x28] sm:$0xff]   ;;  %v2888_v30 = vmov 2475754826   ;;  %s2894_s13 = smov [#allocation7]  }
  0x20   :  { %2452 = vmatprep.subr.bf16.mxu1 %v2885_v7  ;;  %2433 = vmatpush3.bf16.msra.mxu0 %v2639_v6  ;;  %v2642_v10 = vld [vmem:[#allocation2 + $0x20] sm:$0xff]   ;;  %v2643_v11 = vld [vmem:[#allocation2 + $0x18] sm:$0xff]   ;;  %v2644_v12 = vld [vmem:[#allocation2 + $0x10] sm:$0xff]   ;;  %v2889_v33 = vmov 2131351028   ;;  %s2183_s14 = sshll.u32 %s2894_s13, 4  ;;  %s2184_s14 = int_to_ptr.vmem [resolvable:$true] %s2183_s14 }
  0x21   :  { %2434 = vmatprep.subr.bf16.mxu0 %v2885_v7  ;;  %2448 = vmatprep.mubr.msk.bf16.mxu0 %vm2886_vm0, %v2885_v7  ;;  %v2645_v13 = vld [vmem:[#allocation2 + $0x8] sm:$0xff]   ;;  %v2646_v14 = vld [vmem:[#allocation2] sm:$0xff]   ;;  %v2890_v36 = vmov 2102212464   ;;  %v2891_v39 = vmov 920167782   ;;  %p2857_p11 = scmp.lt.s32.totalorder %s2184_s14, %s2184_s14 }
  0x22   :  { %2468 = vmatprep.mubr.msk.bf16.mxu1 %vm2886_vm0, %v2885_v7  ;;  %v2193_v15 = vld [vmem:[%s3224_s6] ss:$0 sm:$0xff]  ;;  %v2892_v42 = vmov 1326507024   ;;  %s2852_s16 = scalar_lea.vmem %s2184_s14, 128 }
  0x23   :  { %1557 = vperm.xlu0 %2637, %v1547_v2   ;;  %p2853_p10 = scmp.ne.s32.totalorder %s2184_s14, %s2852_s16  ;;  %p2858_p12 = scmp.lt.s32.totalorder %s2852_s16, %s2852_s16 }
  0x24   :  { %2435 = vmatpush3.bf16.msra.mxu0 %v2640_v8 }
  0x25   :  { %2436 = vmatprep.subr.bf16.mxu0 %v2885_v7  ;;  %p2859_p13 = por %p2858_p12, %p2857_p11 }
  0x27   :  { %1572 = vperm.xlu0 %2637, %v1550_v3   ;;  %p2860_p0 = pnand %p2859_p13, %p2853_p10 }
  0x28   :  { %2437 = vmatpush3.bf16.msra.mxu0 %v2641_v9 }
  0x29   :  { %2438 = vmatprep.subr.bf16.mxu0 %v2885_v7 }
  0x2b   :  { %1582 = vperm.xlu0 %2637, %v1552_v4  }
  0x2c   :  { %2439 = vmatpush3.bf16.msra.mxu0 %v2642_v10 }
  0x2d   :  { %2440 = vmatprep.subr.bf16.mxu0 %v2885_v7 }
  0x2f   :  { %1592 = vperm.xlu0 %2637, %v1554_v5  }
  0x30   :  { %2441 = vmatpush3.bf16.msra.mxu0 %v2643_v11 }
  0x31   :  { %2442 = vmatprep.subr.bf16.mxu0 %v2885_v7 }
  0x34   :  { %2443 = vmatpush3.bf16.msra.mxu0 %v2644_v12 }
  0x35   :  { %2444 = vmatprep.subr.bf16.mxu0 %v2885_v7 }
  0x38   :  { %2445 = vmatpush3.bf16.msra.mxu0 %v2645_v13 }
  0x39   :  { %2446 = vmatprep.subr.bf16.mxu0 %v2885_v7 }
  0x3c   :  { %2447 = vmatpush3.bf16.msra.mxu0 %v2646_v14 }
  0x3d   :  { %2472 = vmatprep.subr.bf16.mxu0 %v2885_v7 }
  0x9a   :  { %v70_v16 = vpop.permute.xlu0 %69 }
  0x9b   :  { %v2975_v17 = vmul.f32 %v2193_v15, %v70_v16 }
  0x9d   :  { %v83_v18 = vand.u32 2139095040, %v2975_v17  ;;  %v80_v22 = vand.u32 2147483647, %v2975_v17  ;;  %vm82_vm8 = vcmp.lt.s32.totalorder %v2975_v17, 0 }
  0x9f   :  { %v84_v19 = vshrl.u32 %v83_v18, 23  ;;  %v87_v25 = vand.u32 8388607, %v80_v22  ;;  %vm81_vm9 = vcmp.le.f32.partialorder %v80_v22, 0.7853982 }
  0xa1   :  { %v2194_v20 = vadd.s32 4294967169, %v84_v19  ;;  %v88_v44 = vor.u32 8388608, %v87_v25 }
  0xa3   :  { %v90_v21 = vadd.s32 1, %v2194_v20  ;;  %v128_v58 = vshll.u32 %v88_v44, 8 }
  0xa5   :  { %vm91_vm1 = vcmp.gt.s32.totalorder %v90_v21, 0 }
  0xa6   :  { %v92_v23 = vsel %vm91_vm1, %v90_v21, 0 }
  0xa7   :  { %v94_v24 = vand.u32 31, %v92_v23  ;;  %v93_v27 = vshrl.u32 %v92_v23, 5 }
  0xa9   :  { %v95_v26 = vsub.s32 32, %v94_v24  ;;  %v97_v29 = vshll.u32 %v2887_v28, %v94_v24  ;;  %v100_v31 = vshll.u32 %v2888_v30, %v94_v24  ;;  %v103_v35 = vshll.u32 %v2889_v33, %v94_v24 }
  0xaa   :  { %v106_v38 = vshll.u32 %v2890_v36, %v94_v24  ;;  %v109_v41 = vshll.u32 %v2891_v39, %v94_v24  ;;  %vm112_vm2 = vcmp.lt.s32.totalorder %v93_v27, 1  ;;  %vm115_vm3 = vcmp.lt.s32.totalorder %v93_v27, 4 }
  0xab   :  { %v98_v32 = vshrl.u32 %v2888_v30, %v95_v26  ;;  %v101_v34 = vshrl.u32 %v2889_v33, %v95_v26  ;;  %v104_v37 = vshrl.u32 %v2890_v36, %v95_v26  ;;  %v107_v40 = vshrl.u32 %v2891_v39, %v95_v26 }
  0xac   :  { %v110_v43 = vshrl.u32 %v2892_v42, %v95_v26  ;;  %v96_v53 = vshrl.u32 %v2887_v28, %v95_v26  ;;  %vm114_vm4 = vcmp.lt.s32.totalorder %v93_v27, 3  ;;  %vm113_vm5 = vcmp.lt.s32.totalorder %v93_v27, 2 }
  0xad   :  { %v99_v45 = vor.u32 %v98_v32, %v97_v29  ;;  %v102_v46 = vor.u32 %v101_v34, %v100_v31  ;;  %v105_v47 = vor.u32 %v104_v37, %v103_v35  ;;  %v108_v48 = vor.u32 %v107_v40, %v106_v38 }
  0xae   :  { %v111_v49 = vor.u32 %v110_v43, %v109_v41  ;;  %v77_v39 = vlaneseq }
  0xaf   :  { %v117_v50 = vsel %vm115_vm3, %v105_v47, 2102212464  ;;  %v120_v51 = vsel %vm112_vm2, %v99_v45, %v102_v46  ;;  %v124_v52 = vsel %vm112_vm2, %v102_v46, %v105_v47  ;;  %v121_v54 = vsel %vm115_vm3, %v108_v48, 920167782 }
  0xb0   :  { %v125_v55 = vsel %vm115_vm3, %v111_v49, 1326507024  ;;  %v122_v56 = vsel %vm114_vm4, %v105_v47, %v121_v54  ;;  %v116_v59 = vsel %vm112_vm2, %v96_v53, %v99_v45  ;;  %v118_v60 = vsel %vm114_vm4, %v102_v46, %v117_v50 }
  0xb1   :  { %v126_v57 = vsel %vm114_vm4, %v108_v48, %v125_v55  ;;  %v123_v61 = vsel %vm113_vm5, %v120_v51, %v122_v56  ;;  %v119_v4 = vsel %vm113_vm5, %v116_v59, %v118_v60  ;;  %v78_v41 = vand.u32 127, %v77_v39  ;;  %v2647_v56 = vld [vmem:[#allocation2 + $0xb8] sm:$0xff]   ;;  %v2649_v59 = vld [vmem:[#allocation2 + $0xa8] sm:$0xff]  }
  0xb2   :  { %v127_v62 = vsel %vm113_vm5, %v124_v52, %v126_v57  ;;  %v2984_v2 = vmul.u32.u64.low %v128_v58, %v123_v61  ;;  %v2985_v3 = vmul.u32.u64.high %v128_v58, %v123_v61, %v2984_v2  ;;  %v135_v6 = vmul.u32 %v128_v58, %v119_v4  ;;  %v2651_v60 = vld [vmem:[#allocation2 + $0x98] sm:$0xff]   ;;  %v2652_v61 = vld [vmem:[#allocation2 + $0x90] sm:$0xff]  }
  0xb3   :  { %v2981_v63 = vmul.u32.u64.low %v128_v58, %v127_v62  ;;  %v2982_v1 = vmul.u32.u64.high %v128_v58, %v127_v62, %v2981_v63  ;;  %vm79_vm10 = vcmp.lt.s32.totalorder %v78_v41, 64  ;;  %vm172_vm2 = vweird.f32 %v2975_v17  ;;  %v2648_v58 = vld [vmem:[#allocation2 + $0xb0] sm:$0xff]   ;;  %v2653_v62 = vld [vmem:[#allocation2 + $0x88] sm:$0xff]  }
  0xb4   :  { %v138_v5 = vadd.s32 1, %v2985_v3  ;;  %v2654_v63 = vld [vmem:[#allocation2 + $0x80] sm:$0xff]   ;;  %v2656_v4 = vld [vmem:[#allocation2 + $0x70] sm:$0xff]   ;;  %vm1841_vm3 = vcmask 1041409   ;;  %vm1843_vm4 = vcmask 1042434   ;;  %vm1845_vm5 = vcmask 1043459  }
  0xb5   :  { %vm137_vm6 = vc.u32 %v2982_v1, %v2984_v2  ;;  %v136_v20 = vadd.s32 %v2984_v2, %v2982_v1  ;;  %v56_v1 = vld [vmem:[%s3219_s1] sm:$0xff]  ;;  %v2668_v41 = vld [vmem:[#allocation2 + $0xd0] sm:$0xff]  }
  0xb6   :  { %v139_v8 = vsel %vm137_vm6, %v138_v5, %v2985_v3  ;;  %v518_v2 = vpack.c.bf16 %v56_v1, %v56_v1  ;;  %v2655_v3 = vld [vmem:[#allocation2 + $0x78] sm:$0xff]   ;;  %v2657_v5 = vld [vmem:[#allocation2 + $0x68] sm:$0xff]   ;;  %vm1847_vm6 = vcmask 1044484  }
  0xb7   :  { %v140_v9 = vadd.s32 %v139_v8, %v135_v6  ;;  %2453 = vmatpush3.bf16.msra.mxu1 %v2655_v3  ;;  %v2658_v6 = vld [vmem:[#allocation2 + $0x60] sm:$0xff]   ;;  %v2659_v8 = vld [vmem:[#allocation2 + $0x58] sm:$0xff]  }
  0xb8   :  { %2454 = vmatprep.subr.bf16.mxu1 %v2885_v7  ;;  %v2718_v1 = vld [vmem:[#allocation5 + $0x20] ss:$8 sps:$4 sm:$0xff]   ;;  %v2722_v3 = vld [vmem:[#allocation5 + $0x10] ss:$8 sps:$4 sm:$0xff]  }
  0xb9   :  { %v141_v10 = vadd.s32 536870912, %v140_v9 }
  0xbb   :  { %v142_v11 = vshrl.u32 %v141_v10, 30  ;;  %2455 = vmatpush3.bf16.msra.mxu1 %v2656_v4  ;;  %v2661_v10 = vld [vmem:[#allocation2 + $0x48] sm:$0xff]   ;;  %v2724_v4 = vld [vmem:[#allocation5 + $0x14] ss:$8 sps:$4 sm:$0xff]  }
  0xbc   :  { %2456 = vmatprep.subr.bf16.mxu1 %v2885_v7 }
  0xbd   :  { %v143_v12 = vshll.u32 %v142_v11, 30  ;;  %v166_v34 = vsub.s32 4, %v142_v11 }
  0xbf   :  { %v144_v13 = vsub.s32 %v140_v9, %v143_v12  ;;  %v167_v37 = vsel %vm82_vm8, %v166_v34, %v142_v11  ;;  %2457 = vmatpush3.bf16.msra.mxu1 %v2657_v5  ;;  %v2660_v9 = vld [vmem:[#allocation2 + $0x50] sm:$0xff]   ;;  %v2662_v11 = vld [vmem:[#allocation2 + $0x40] sm:$0xff]  }
  0xc0   :  { %v169_v38 = vsel %vm81_vm9, 0, %v167_v37  ;;  %2458 = vmatprep.subr.bf16.mxu1 %v2885_v7  ;;  %v2202_v12 = vld [vmem:[%s3224_s6 + $0x1] ss:$0 sm:$0xff]  ;;  %v2664_v34 = vld [vmem:[#allocation2 + $0xf0] sm:$0xff]  }
  0xc1   :  { %v146_v14 = vsub.s32 0, %v144_v13  ;;  %v276_v40 = vadd.s32 3, %v169_v38  ;;  %v173_v42 = vand.u32 3, %v169_v38 }
  0xc3   :  { %v2195_v15 = vmin.u32 %v146_v14, %v144_v13  ;;  %v277_v43 = vand.u32 3, %v276_v40  ;;  %vm178_vm11 = vcmp.eq.s32.totalorder %v173_v42, 2  ;;  %vm175_vm13 = vcmp.eq.s32.totalorder %v173_v42, 0  ;;  %2459 = vmatpush3.bf16.msra.mxu1 %v2658_v6  ;;  %v2667_v40 = vld [vmem:[#allocation2 + $0xd8] sm:$0xff]  }
  0xc4   :  { %vm174_vm15 = vcmp.lt.s32.totalorder %v173_v42, 2  ;;  %2460 = vmatprep.subr.bf16.mxu1 %v2885_v7  ;;  %v2669_v42 = vld [vmem:[#allocation2 + $0xc8] sm:$0xff]  }
  0xc5   :  { %v148_v16 = vclz %v2195_v15  ;;  %vm282_vm12 = vcmp.eq.s32.totalorder %v277_v43, 2  ;;  %vm279_vm14 = vcmp.eq.s32.totalorder %v277_v43, 0  ;;  %vm278_vm1 = vcmp.lt.s32.totalorder %v277_v43, 2  ;;  %v2670_v43 = vld [vmem:[#allocation2 + $0xc0] sm:$0xff]  }
  0xc7   :  { %v2196_v18 = vadd.s32 4294967294, %v148_v16  ;;  %2461 = vmatpush3.bf16.msra.mxu1 %v2659_v8 }
  0xc8   :  { %2462 = vmatprep.subr.bf16.mxu1 %v2885_v7 }
  0xc9   :  { %vm2197_vm7 = vcmp.lt.s32.totalorder %v2196_v18, 0 }
  0xca   :  { %v151_v19 = vsel %vm2197_vm7, 0, %v2196_v18  ;;  %vm1849_vm7 = vcmask 1045509  }
  0xcb   :  { %v152_v21 = vsub.s32 32, %v151_v19  ;;  %v156_v23 = vsub.s32 4294967266, %v151_v19  ;;  %v153_v24 = vshll.u32 %v144_v13, %v151_v19  ;;  %2463 = vmatpush3.bf16.msra.mxu1 %v2660_v9 }
  0xcc   :  { %2464 = vmatprep.subr.bf16.mxu1 %v2885_v7 }
  0xcd   :  { %v154_v25 = vshrl.u32 %v136_v20, %v152_v21  ;;  %v157_v26 = vadd.s32 127, %v156_v23  ;;  %v2221_v23 = vld [vmem:[%s3224_s6 + $0x3] ss:$0 sm:$0xff] }
  0xcf   :  { %v155_v27 = vor.u32 %v154_v25, %v153_v24  ;;  %v158_v28 = vshll.u32 %v157_v26, 23  ;;  %2465 = vmatpush3.bf16.msra.mxu1 %v2661_v10  ;;  %v2212_v10 = vld [vmem:[%s3224_s6 + $0x2] ss:$0 sm:$0xff] }
  0xd0   :  { %2466 = vmatprep.subr.bf16.mxu1 %v2885_v7 }
  0xd1   :  { %v159_v29 = vor.u32 4788187, %v158_v28  ;;  %v162_v31 = vcvt.s32.f32 %v155_v27 }
  0xd3   :  { %v160_v30 = vand.u32 2147483647, %v159_v29  ;;  %2467 = vmatpush3.bf16.msra.mxu1 %v2662_v11  ;;  %v2231_v11 = vld [vmem:[%s3224_s6 + $0x4] ss:$0 sm:$0xff] }
  0xd4   :  { %2492 = vmatprep.subr.bf16.mxu1 %v2885_v7 }
  0xd5   :  { %v163_v32 = vmul.f32 %v162_v31, %v160_v30  ;;  %v2663_v31 = vld [vmem:[#allocation2 + $0xf8] sm:$0xff]  }
  0xd7   :  { %v164_v33 = vxor.u32 2147483648, %v163_v32 }
  0xd9   :  { %v165_v35 = vsel %vm82_vm8, %v164_v33, %v163_v32  ;;  %vm1851_vm8 = vcmask 1046534  }
  0xda   :  { %v168_v36 = vsel %vm81_vm9, %v2975_v17, %v165_v35  ;;  %v2650_v17 = vld [vmem:[#allocation2 + $0xa0] sm:$0xff]   ;;  %v2665_v35 = vld [vmem:[#allocation2 + $0xe8] sm:$0xff]   ;;  %vm1853_vm9 = vcmask 1047559  }
  0xdb   :  { %2763 = vcosq.f32 %v168_v36 }
  0xdc   :  { %2765 = vsinq.f32 %v168_v36  ;;  %v2666_v36 = vld [vmem:[#allocation2 + $0xe0] sm:$0xff]  }
  0xe8   :  { %v2764_v44 = vpop.eup %2763 }
  0xe9   :  { %v2766_v45 = vpop.eup %2765  ;;  %v179_v46 = vxor.u32 2147483648, %v2764_v44 }
  0xea   :  { %v176_v47 = vxor.u32 2147483648, %v2766_v45 }
  0xeb   :  { %v180_v22 = vsel %vm178_vm11, %v179_v46, %v2766_v45  ;;  %v284_v48 = vsel %vm282_vm12, %v179_v46, %v2766_v45 }
  0xec   :  { %v177_v49 = vsel %vm175_vm13, %v2764_v44, %v176_v47  ;;  %v281_v50 = vsel %vm279_vm14, %v2764_v44, %v176_v47  ;;  %v2671_v47 = vld [vmem:[#allocation2 + $0x138] sm:$0xff]  }
  0xed   :  { %v181_v51 = vsel %vm174_vm15, %v177_v49, %v180_v22  ;;  %v285_v52 = vsel %vm278_vm1, %v281_v50, %v284_v48  ;;  %v2672_v22 = vld [vmem:[#allocation2 + $0x130] sm:$0xff]   ;;  %v2673_v48 = vld [vmem:[#allocation2 + $0x128] sm:$0xff]   ;;  %v2674_v49 = vld [vmem:[#allocation2 + $0x120] sm:$0xff]  }
  0xee   :  { %v182_v53 = vsel %vm172_vm2, nan, %v181_v51  ;;  %v286_v54 = vsel %vm172_vm2, nan, %v285_v52  ;;  %v2675_v50 = vld [vmem:[#allocation2 + $0x118] sm:$0xff]   ;;  %v2676_v51 = vld [vmem:[#allocation2 + $0x110] sm:$0xff]   ;;  %v2677_v52 = vld [vmem:[#allocation2 + $0x108] sm:$0xff]  }
  0xef   :  { %v289_v55 = vsel %vm79_vm10, %v182_v53, %v286_v54  ;;  %v2678_v53 = vld [vmem:[#allocation2 + $0x100] sm:$0xff]   ;;  %v2681_v54 = vld [vmem:[#allocation5 + $0xf4] ss:$8 sps:$4 sm:$0xff]  }
  0xf0   :  { %v290_v57 = vpack.c.bf16 %v289_v55, %v289_v55  ;;  %v2688_v55 = vld [vmem:[#allocation5 + $0x70] ss:$8 sps:$4 sm:$0xff]  }
  0xf2   :  { %2449 = vmatmul.mubr.bf16.vlgmr.msra.gmra.mxu0 %v290_v57  ;;  %v2694_v57 = vld [vmem:[#allocation5 + $0x60] ss:$8 sps:$4 sm:$0xff]  }
  0xf3   :  { %2473 = vmatpush3.bf16.msra.mxu0 %v2647_v56  ;;  %2488 = vmatprep.mubr.msk.bf16.mxu0 %vm2886_vm0, %v2885_v7  ;;  %v2690_v56 = vld [vmem:[#allocation5 + $0x74] ss:$8 sps:$4 sm:$0xff]  }
  0xf4   :  { %2474 = vmatprep.subr.bf16.mxu0 %v2885_v7 }
  0xf7   :  { %2475 = vmatpush3.bf16.msra.mxu0 %v2648_v58  ;;  %v2696_v58 = vld [vmem:[#allocation5 + $0x64] ss:$8 sps:$4 sm:$0xff]  }
  0xf8   :  { %2476 = vmatprep.subr.bf16.mxu0 %v2885_v7 }
  0xfb   :  { %2477 = vmatpush3.bf16.msra.mxu0 %v2649_v59  ;;  %v2700_v59 = vld [vmem:[#allocation5 + $0x50] ss:$8 sps:$4 sm:$0xff]  }
  0xfc   :  { %2478 = vmatprep.subr.bf16.mxu0 %v2885_v7 }
  0xff   :  { %2479 = vmatpush3.bf16.msra.mxu0 %v2650_v17  ;;  %v2702_v17 = vld [vmem:[#allocation5 + $0x54] ss:$8 sps:$4 sm:$0xff]  }
 0x100   :  { %2480 = vmatprep.subr.bf16.mxu0 %v2885_v7 }
 0x103   :  { %2481 = vmatpush3.bf16.msra.mxu0 %v2651_v60  ;;  %v2706_v60 = vld [vmem:[#allocation5 + $0x40] ss:$8 sps:$4 sm:$0xff]  }
 0x104   :  { %2482 = vmatprep.subr.bf16.mxu0 %v2885_v7 }
 0x107   :  { %2483 = vmatpush3.bf16.msra.mxu0 %v2652_v61  ;;  %v2708_v61 = vld [vmem:[#allocation5 + $0x44] ss:$8 sps:$4 sm:$0xff]  }
 0x108   :  { %2484 = vmatprep.subr.bf16.mxu0 %v2885_v7 }
 0x10b   :  { %2485 = vmatpush3.bf16.msra.mxu0 %v2653_v62  ;;  %v2712_v62 = vld [vmem:[#allocation5 + $0x30] ss:$8 sps:$4 sm:$0xff]  }
 0x10c   :  { %2486 = vmatprep.subr.bf16.mxu0 %v2885_v7 }
 0x10f   :  { %2487 = vmatpush3.bf16.msra.mxu0 %v2654_v63  ;;  %v2714_v63 = vld [vmem:[#allocation5 + $0x34] ss:$8 sps:$4 sm:$0xff]  }
 0x110   :  { %2512 = vmatprep.subr.bf16.mxu0 %v2885_v7 }
 0x112   :  { %2489 = vmatmul.mubr.bf16.vlgmr.msra.gmra.mxu0 %v518_v2  ;;  %v2720_v2 = vld [vmem:[#allocation5 + $0x24] ss:$8 sps:$4 sm:$0xff]  }
 0x113   :  { %2528 = vmatprep.mubr.msk.bf16.mxu0 %vm2886_vm0, %v2885_v7  ;;  %2513 = vmatpush3.bf16.msra.mxu0 %v2671_v47 }
 0x114   :  { %2514 = vmatprep.subr.bf16.mxu0 %v2885_v7 }
 0x117   :  { %2515 = vmatpush3.bf16.msra.mxu0 %v2672_v22 }
 0x118   :  { %2516 = vmatprep.subr.bf16.mxu0 %v2885_v7 }
 0x11b   :  { %2517 = vmatpush3.bf16.msra.mxu0 %v2673_v48 }
 0x11c   :  { %2518 = vmatprep.subr.bf16.mxu0 %v2885_v7 }
 0x11f   :  { %2519 = vmatpush3.bf16.msra.mxu0 %v2674_v49  ;;  %v2732_v49 = vld [vmem:[#allocation2 + $0x230] sm:$0xff]  }
 0x120   :  { %2520 = vmatprep.subr.bf16.mxu0 %v2885_v7 }
 0x123   :  { %2521 = vmatpush3.bf16.msra.mxu0 %v2675_v50 }
 0x124   :  { %2522 = vmatprep.subr.bf16.mxu0 %v2885_v7 }
 0x127   :  { %2523 = vmatpush3.bf16.msra.mxu0 %v2676_v51  ;;  %v2733_v51 = vld [vmem:[#allocation2 + $0x228] sm:$0xff]  }
 0x128   :  { %2524 = vmatprep.subr.bf16.mxu0 %v2885_v7 }
 0x12b   :  { %2525 = vmatpush3.bf16.msra.mxu0 %v2677_v52  ;;  %v2734_v52 = vld [vmem:[#allocation2 + $0x220] sm:$0xff]  }
 0x12c   :  { %2526 = vmatprep.subr.bf16.mxu0 %v2885_v7 }
 0x12f   :  { %2527 = vmatpush3.bf16.msra.mxu0 %v2678_v53  ;;  %v2735_v53 = vld [vmem:[#allocation2 + $0x218] sm:$0xff]  }
 0x130   :  { %1124 = vmatprep.subr.bf16.mxu0 %v2681_v54  ;;  %v2736_v54 = vld [vmem:[#allocation2 + $0x210] sm:$0xff]  }
 0x1b2   :  { %v394_v13 = vpop.f32.mrf.mxu0 }
 0x1b3   :  { %v395_v14 = vadd.f32 %v2202_v12, %v394_v13 }
 0x1b4   :  { %v2450_v15 = vpop.f32.mrf.mxu0 }
 0x1b5   :  { %v2211_v16 = vmul.f32 -1.442695, %v395_v14 }
 0x1b6   :  { %v397_v18 = vpop.f32.mrf.mxu0 }
 0x1b7   :  { %2767 = vpow2.f32 %v2211_v16 }
 0x1b8   :  { %v2451_v19 = vpop.f32.mrf.mxu0 }
 0x1b9   :  { %v2679_v19 = vld [vmem:[#allocation5 + $0xf0] ss:$8 sps:$4 sm:$0xff]  }
 0x1c4   :  { %v2768_v20 = vpop.eup %2767 }
 0x1c5   :  { %v403_v21 = vadd.f32 1.0, %v2768_v20 }
 0x1c7   :  { %2769 = vrcp.f32 %v403_v21  ;;  %v2684_v21 = vld [vmem:[#allocation5 + $0xe4] ss:$8 sps:$4 sm:$0xff]  }
 0x1d2   :  { %v623_v24 = vpop.f32.mrf.mxu0 }
 0x1d3   :  { %v624_v25 = vadd.f32 %v2221_v23, %v623_v24  ;;  %v2682_v24 = vld [vmem:[#allocation5 + $0xe0] ss:$8 sps:$4 sm:$0xff]  }
 0x1d4   :  { %v2770_v26 = vpop.eup %2769  ;;  %v2490_v27 = vpop.f32.mrf.mxu0 }
 0x1d5   :  { %v406_v28 = vmul.f32 %v2770_v26, %v395_v14  ;;  %v2230_v29 = vmul.f32 -1.442695, %v624_v25  ;;  %v2685_v26 = vld [vmem:[#allocation5 + $0xd0] ss:$8 sps:$4 sm:$0xff]   ;;  %v2693_v27 = vld [vmem:[#allocation5 + $0xc4] ss:$8 sps:$4 sm:$0xff]  }
 0x1d6   :  { %v626_v30 = vpop.f32.mrf.mxu0 }
 0x1d7   :  { %v407_v32 = vpack.c.bf16 %v406_v28, %v406_v28  ;;  %2771 = vpow2.f32 %v2230_v29  ;;  %v2691_v28 = vld [vmem:[#allocation5 + $0xc0] ss:$8 sps:$4 sm:$0xff]   ;;  %v2699_v29 = vld [vmem:[#allocation5 + $0xb4] ss:$8 sps:$4 sm:$0xff]   ;;  %v2697_v30 = vld [vmem:[#allocation5 + $0xb0] ss:$8 sps:$4 sm:$0xff]  }
 0x1d8   :  { %v2491_v33 = vpop.f32.mrf.mxu0 }
 0x1d9   :  { %2469 = vmatmul.mubr.bf16.vlgmr.msra.gmra.mxu1 %v407_v32  ;;  %v2703_v32 = vld [vmem:[#allocation5 + $0xa0] ss:$8 sps:$4 sm:$0xff]   ;;  %v2711_v33 = vld [vmem:[#allocation5 + $0x94] ss:$8 sps:$4 sm:$0xff]  }
 0x1da   :  { %2493 = vmatpush3.bf16.msra.mxu1 %v2663_v31  ;;  %2508 = vmatprep.mubr.msk.bf16.mxu1 %vm2886_vm0, %v2885_v7  ;;  %v2705_v31 = vld [vmem:[#allocation5 + $0xa4] ss:$8 sps:$4 sm:$0xff]  }
 0x1db   :  { %2494 = vmatprep.subr.bf16.mxu1 %v2885_v7 }
 0x1de   :  { %2495 = vmatpush3.bf16.msra.mxu1 %v2664_v34  ;;  %v2709_v34 = vld [vmem:[#allocation5 + $0x90] ss:$8 sps:$4 sm:$0xff]  }
 0x1df   :  { %2496 = vmatprep.subr.bf16.mxu1 %v2885_v7 }
 0x1e2   :  { %2497 = vmatpush3.bf16.msra.mxu1 %v2665_v35  ;;  %v2717_v35 = vld [vmem:[#allocation5 + $0x84] ss:$8 sps:$4 sm:$0xff]  }
 0x1e3   :  { %2498 = vmatprep.subr.bf16.mxu1 %v2885_v7 }
 0x1e4   :  { %v2772_v37 = vpop.eup %2771 }
 0x1e5   :  { %v632_v38 = vadd.f32 1.0, %v2772_v37  ;;  %v2721_v37 = vld [vmem:[%s3220_s2] sm:$0xff]  }
 0x1e6   :  { %2499 = vmatpush3.bf16.msra.mxu1 %v2666_v36  ;;  %v2715_v36 = vld [vmem:[#allocation5 + $0x80] ss:$8 sps:$4 sm:$0xff]  }
 0x1e7   :  { %2773 = vrcp.f32 %v632_v38  ;;  %2500 = vmatprep.subr.bf16.mxu1 %v2885_v7  ;;  %v2727_v38 = vld [vmem:[#allocation5 + $0x4] ss:$8 sps:$4 sm:$0xff]  }
 0x1ea   :  { %2501 = vmatpush3.bf16.msra.mxu1 %v2667_v40  ;;  %v2725_v40 = vld [vmem:[#allocation5] ss:$8 sps:$4 sm:$0xff]  }
 0x1eb   :  { %2502 = vmatprep.subr.bf16.mxu1 %v2885_v7 }
 0x1ee   :  { %2503 = vmatpush3.bf16.msra.mxu1 %v2668_v41  ;;  %v2728_v41 = vld [vmem:[%s3220_s2 + $0x8] sm:$0xff]  }
 0x1ef   :  { %2504 = vmatprep.subr.bf16.mxu1 %v2885_v7 }
 0x1f2   :  { %2505 = vmatpush3.bf16.msra.mxu1 %v2669_v42  ;;  %v2729_v42 = vld [vmem:[%s3220_s2 + $0x10] sm:$0xff]  }
 0x1f3   :  { %2506 = vmatprep.subr.bf16.mxu1 %v2885_v7 }
 0x1f4   :  { %v2774_v44 = vpop.eup %2773 }
 0x1f5   :  { %v635_v45 = vmul.f32 %v2774_v44, %v624_v25  ;;  %v2687_v25 = vld [vmem:[#allocation5 + $0xd4] ss:$8 sps:$4 sm:$0xff]  }
 0x1f6   :  { %2507 = vmatpush3.bf16.msra.mxu1 %v2670_v43  ;;  %v2730_v43 = vld [vmem:[%s3220_s2 + $0x18] sm:$0xff]  }
 0x1f7   :  { %v636_v46 = vpack.c.bf16 %v635_v45, %v635_v45  ;;  %956 = vmatprep.subr.bf16.mxu1 %v2690_v56  ;;  %v2731_v44 = vld [vmem:[#allocation2 + $0x238] sm:$0xff]   ;;  %v2240_v45 = vld [vmem:[%s3224_s6 + $0x5] ss:$0 sm:$0xff] }
 0x1f8   :  { %v2738_v56 = vld [vmem:[#allocation2 + $0x200] sm:$0xff]  }
 0x1f9   :  { %2509 = vmatmul.mubr.bf16.vlgmr.msra.gmra.mxu1 %v636_v46 }
 0x1fa   :  { %988 = vmatprep.mubr.bf16.mxu1 %v2884_v0  ;;  %957 = vmatpush1.bf16.msra.mxu1 %v2688_v55  ;;  %v2737_v55 = vld [vmem:[#allocation2 + $0x208] sm:$0xff]  }
 0x1fb   :  { %958 = vmatprep.subr.bf16.mxu1 %v2696_v58  ;;  %v1549_v58 = vld [vmem:[%s3221_s3 + $0x10] sm:$0xff] }
 0x1fe   :  { %959 = vmatpush1.bf16.msra.mxu1 %v2694_v57  ;;  %v1548_v57 = vld [vmem:[%s3221_s3 + $0x8] sm:$0xff] }
 0x1ff   :  { %960 = vmatprep.subr.bf16.mxu1 %v2702_v17  ;;  %1562 = vperm.xlu1 %2638, %v1548_v57   ;;  %v1553_v17 = vld [vmem:[%s3221_s3 + $0x30] sm:$0xff] }
 0x202   :  { %961 = vmatpush1.bf16.msra.mxu1 %v2700_v59  ;;  %v1551_v59 = vld [vmem:[%s3221_s3 + $0x20] sm:$0xff] }
 0x203   :  { %962 = vmatprep.subr.bf16.mxu1 %v2708_v61  ;;  %1567 = vperm.xlu1 %2638, %v1549_v58  }
 0x206   :  { %963 = vmatpush1.bf16.msra.mxu1 %v2706_v60 }
 0x207   :  { %964 = vmatprep.subr.bf16.mxu1 %v2714_v63  ;;  %1577 = vperm.xlu1 %2638, %v1551_v59  }
 0x20a   :  { %965 = vmatpush1.bf16.msra.mxu1 %v2712_v62 }
 0x20b   :  { %966 = vmatprep.subr.bf16.mxu1 %v2720_v2  ;;  %1587 = vperm.xlu1 %2638, %v1553_v17  }
 0x20e   :  { %967 = vmatpush1.bf16.msra.mxu1 %v2718_v1 }
 0x20f   :  { %968 = vmatprep.subr.bf16.mxu1 %v2724_v4 }
 0x212   :  { %969 = vmatpush1.bf16.msra.mxu1 %v2722_v3 }
 0x213   :  { %970 = vmatprep.subr.bf16.mxu1 %v2727_v38 }
 0x216   :  { %971 = vmatpush1.bf16.msra.mxu1 %v2725_v40 }
 0x217   :  { %2532 = vmatprep.subr.bf16.mxu1 %v2731_v44 }
 0x299   :  { %v512_v5 = vpop.f32.mrf.mxu1 }
 0x29a   :  { %v513_v13 = vadd.f32 %v2212_v10, %v512_v5 }
 0x29b   :  { %v2470_v6 = vpop.f32.mrf.mxu1 }
 0x29c   :  { %v2893_v6 = vmov 1966171168  }
 0x29d   :  { %v515_v8 = vpop.f32.mrf.mxu1 }
 0x29e   :  { %v1230_v8 = vunpack.c.l.s4 %v2893_v6 }
 0x29f   :  { %v2471_v9 = vpop.f32.mrf.mxu1 }
 0x2a0   :  { %v1231_v10 = vunpack.c.0.s8 %v1230_v8 }
 0x2b9   :  { %v741_v12 = vpop.f32.mrf.mxu1 }
 0x2ba   :  { %v742_v14 = vadd.f32 %v2231_v11, %v741_v12  ;;  %v1233_v11 = vshrl.u32 %v77_v39, 7  ;;  %v2265_v12 = vld [vmem:[%s3224_s6 + $0x6] ss:$0 sm:$0xff] }
 0x2bb   :  { %v2510_v15 = vpop.f32.mrf.mxu1 }
 0x2bc   :  { %v747_v16 = vadd.f32 %v742_v14, %v513_v13 }
 0x2bd   :  { %v744_v18 = vpop.f32.mrf.mxu1 }
 0x2be   :  { %v748_v20 = vpack.c.bf16 %v747_v16, %v747_v16  ;;  %v1234_v16 = vsub.s32 %v1231_v10, %v1233_v11 }
 0x2bf   :  { %v2511_v23 = vpop.f32.mrf.mxu1 }
 0x2c0   :  { %2529 = vmatmul.mubr.bf16.vlgmr.msra.gmra.mxu0 %v748_v20 }
 0x2c1   :  { %1125 = vmatpush1.bf16.msra.mxu0 %v2679_v19  ;;  %1156 = vmatprep.mubr.bf16.mxu0 %v2884_v0  ;;  %v2286_v19 = vld [vmem:[%s3224_s6 + $0x7] ss:$0 sm:$0xff] }
 0x2c2   :  { %1126 = vmatprep.subr.bf16.mxu0 %v2684_v21 }
 0x2c5   :  { %1127 = vmatpush1.bf16.msra.mxu0 %v2682_v24 }
 0x2c6   :  { %1128 = vmatprep.subr.bf16.mxu0 %v2687_v25 }
 0x2c9   :  { %1129 = vmatpush1.bf16.msra.mxu0 %v2685_v26 }
 0x2ca   :  { %1130 = vmatprep.subr.bf16.mxu0 %v2693_v27 }
 0x2cd   :  { %1131 = vmatpush1.bf16.msra.mxu0 %v2691_v28 }
 0x2ce   :  { %1132 = vmatprep.subr.bf16.mxu0 %v2699_v29 }
 0x2d1   :  { %1133 = vmatpush1.bf16.msra.mxu0 %v2697_v30 }
 0x2d2   :  { %1134 = vmatprep.subr.bf16.mxu0 %v2705_v31  ;;  %v3106_v31 = vsub.s32 0, %v1233_v11 }
 0x2d5   :  { %1135 = vmatpush1.bf16.msra.mxu0 %v2703_v32 }
 0x2d6   :  { %1136 = vmatprep.subr.bf16.mxu0 %v2711_v33 }
 0x2d9   :  { %1137 = vmatpush1.bf16.msra.mxu0 %v2709_v34 }
 0x2da   :  { %1138 = vmatprep.subr.bf16.mxu0 %v2717_v35 }
 0x2dd   :  { %1139 = vmatpush1.bf16.msra.mxu0 %v2715_v36 }
 0x2de   :  { %2556 = vmatprep.subr.bf16.mxu0 %v2885_v7 }
 0x2e0   :  { %1157 = vmatmul.mubr.bf16.vlgmr.msra.gmra.mxu0 %v2721_v37 }
 0x2e1   :  { %1166 = vmatprep.mubr.bf16.mxu0 %v2884_v0 }
 0x2e8   :  { %1167 = vmatmul.mubr.bf16.gmra.mxu0 %v2728_v41 }
 0x2e9   :  { %1176 = vmatprep.mubr.bf16.mxu0 %v2884_v0 }
 0x2f0   :  { %1177 = vmatmul.mubr.bf16.gmra.mxu0 %v2729_v42 }
 0x2f1   :  { %1186 = vmatprep.mubr.bf16.mxu0 %v2884_v0 }
 0x2f8   :  { %1187 = vmatmul.mubr.bf16.gmra.mxu0 %v2730_v43 }
 0x2f9   :  { %2572 = vmatprep.mubr.msk.bf16.mxu0 %vm2886_vm0, %v2885_v7 }
 0x380   :  { %v853_v46 = vpop.f32.mrf.mxu0 }
 0x381   :  { %v854_v47 = vadd.f32 %v2240_v45, %v853_v46 }
 0x382   :  { %v2530_v22 = vpop.f32.mrf.mxu0 }
 0x383   :  { %v859_v48 = vpack.c.bf16 %v854_v47, %v854_v47 }
 0x384   :  { %v856_v0 = vpop.f32.mrf.mxu0 }
 0x385   :  { %989 = vmatmul.mubr.bf16.vlgmr.msra.gmra.mxu1 %v859_v48 }
 0x386   :  { %v2531_v50 = vpop.f32.mrf.mxu0  ;;  %2533 = vmatpush3.bf16.msra.mxu1 %v2731_v44 }
 0x387   :  { %2534 = vmatprep.subr.bf16.mxu1 %v2732_v49 }
 0x38a   :  { %2535 = vmatpush3.bf16.msra.mxu1 %v2732_v49 }
 0x38b   :  { %2536 = vmatprep.subr.bf16.mxu1 %v2733_v51 }
 0x38e   :  { %2537 = vmatpush3.bf16.msra.mxu1 %v2733_v51 }
 0x38f   :  { %2538 = vmatprep.subr.bf16.mxu1 %v2734_v52 }
 0x392   :  { %2539 = vmatpush3.bf16.msra.mxu1 %v2734_v52 }
 0x393   :  { %2540 = vmatprep.subr.bf16.mxu1 %v2735_v53 }
 0x396   :  { %2541 = vmatpush3.bf16.msra.mxu1 %v2735_v53 }
 0x397   :  { %2542 = vmatprep.subr.bf16.mxu1 %v2736_v54 }
 0x39a   :  { %2543 = vmatpush3.bf16.msra.mxu1 %v2736_v54 }
 0x39b   :  { %2544 = vmatprep.subr.bf16.mxu1 %v2737_v55 }
 0x39e   :  { %2545 = vmatpush3.bf16.msra.mxu1 %v2737_v55 }
 0x39f   :  { %2546 = vmatprep.subr.bf16.mxu1 %v2738_v56 }
 0x3a0   :  { %v1158_v60 = vpop.f32.mrf.mxu0 }
 0x3a1   :  { %v1202_v39 = vadd.f32 %v2286_v19, %v1158_v60 }
 0x3a2   :  { %2547 = vmatpush3.bf16.msra.mxu1 %v2738_v56  ;;  %v3085_v61 = vpop.f32.mrf.mxu0 }
 0x3a3   :  { %2576 = vmatprep.subr.bf16.mxu1 %v2885_v7  ;;  %v2340_v37 = vpack.c.bf16 %v1202_v39, %v1202_v39 }
 0x3a4   :  { %v1162_v62 = vpop.f32.mrf.mxu0 }
 0x3a5   :  { %v1203_v25 = vadd.f32 %v2286_v19, %v1162_v62 }
 0x3a6   :  { %v3087_v63 = vpop.f32.mrf.mxu0 }
 0x3a7   :  { %v2341_v38 = vpack.c.bf16 %v1203_v25, %v1203_v25 }
 0x3a8   :  { %v1168_v1 = vpop.f32.mrf.mxu0 }
 0x3a9   :  { %v1204_v26 = vadd.f32 %v2286_v19, %v1168_v1 }
 0x3aa   :  { %v3089_v2 = vpop.f32.mrf.mxu0 }
 0x3ab   :  { %v2342_v40 = vpack.c.bf16 %v1204_v26, %v1204_v26 }
 0x3ac   :  { %v1172_v3 = vpop.f32.mrf.mxu0 }
 0x3ad   :  { %v1205_v27 = vadd.f32 %v2286_v19, %v1172_v3 }
 0x3ae   :  { %v3091_v4 = vpop.f32.mrf.mxu0 }
 0x3af   :  { %v2343_v41 = vpack.c.bf16 %v1205_v27, %v1205_v27 }
 0x3b0   :  { %v1178_v5 = vpop.f32.mrf.mxu0 }
 0x3b1   :  { %v1206_v46 = vadd.f32 %v2286_v19, %v1178_v5 }
 0x3b2   :  { %v3093_v9 = vpop.f32.mrf.mxu0 }
 0x3b4   :  { %v1182_v14 = vpop.f32.mrf.mxu0 }
 0x3b5   :  { %v1207_v60 = vadd.f32 %v2286_v19, %v1182_v14 }
 0x3b6   :  { %v3104_v23 = vpop.f32.mrf.mxu0 }
 0x3b7   :  { %v2345_v39 = vpack.c.bf16 %v1207_v60, %v1207_v60 }
 0x3b8   :  { %v1188_v32 = vpop.f32.mrf.mxu0 }
 0x3b9   :  { %v1208_v26 = vadd.f32 %v2286_v19, %v1188_v32 }
 0x3ba   :  { %v3108_v48 = vpop.f32.mrf.mxu0 }
 0x3bc   :  { %v1192_v1 = vpop.f32.mrf.mxu0 }
 0x445   :  { %v990_v13 = vpop.f32.mrf.mxu1 }
 0x446   :  { %v1002_v15 = vadd.f32 %v2265_v12, %v990_v13  ;;  %v2344_v12 = vpack.c.bf16 %v1206_v46, %v1206_v46  ;;  %v2741_v46 = vld [vmem:[#allocation2 + $0x168] sm:$0xff]  }
 0x447   :  { %v3099_v18 = vpop.f32.mrf.mxu1 }
 0x448   :  { %v1223_v20 = vpack.c.bf16 %v1002_v15, %v1002_v15 }
 0x449   :  { %v994_v21 = vpop.f32.mrf.mxu1 }
 0x44a   :  { %v1235_v24 = vrot.slane %v1223_v20, %v1234_v16  ;;  %v1209_v20 = vadd.f32 %v2286_v19, %v1192_v1 }
 0x44b   :  { %v995_v28 = vpop.f32.mrf.mxu1 }
 0x44c   :  { %v1236_v29 = vcombine.high %v1235_v24, %v1235_v24  ;;  %v1243_v30 = vrot.slane %v1235_v24, %v1234_v16 }
 0x44e   :  { %v1250_v33 = vrot.slane %v1236_v29, %v1234_v16  ;;  %v1251_v34 = vcombine.high %v1243_v30, %v1243_v30  ;;  %v1254_v35 = vunpack.i.h.s16 %v1243_v30  ;;  %v2296_v36 = vpack.i.b16 %v1243_v30, %v1243_v30 }
 0x450   :  { %v1290_v42 = vpack.i.b16 %v1254_v35, %v1254_v35  ;;  %v2297_v43 = vpack.i.b16 %v1250_v33, %v1250_v33  ;;  %v1256_v44 = vunpack.i.h.s16 %v1250_v33  ;;  %v2298_v45 = vpack.i.b16 %v1251_v34, %v1251_v34 }
 0x451   :  { %v1258_v47 = vunpack.i.h.s16 %v1251_v34  ;;  %v1252_v22 = vcombine.high %v1250_v33, %v1250_v33  ;;  %v1300_v49 = vrot.slane %v2296_v36, %v3106_v31 }
 0x452   :  { %v1292_v0 = vpack.i.b16 %v1256_v44, %v1256_v44  ;;  %v1308_v50 = vrot.slane %v2297_v43, %v3106_v31  ;;  %v1316_v51 = vrot.slane %v2298_v45, %v3106_v31  ;;  %v1304_v52 = vrot.slane %v1290_v42, %v3106_v31 }
 0x453   :  { %v1294_v53 = vpack.i.b16 %v1258_v47, %v1258_v47  ;;  %v2299_v54 = vpack.i.b16 %v1252_v22, %v1252_v22  ;;  %v1260_v55 = vunpack.i.h.s16 %v1252_v22  ;;  %v1330_v56 = vpack.i.b16 %v1300_v49, %v1300_v49  ;;  %v2743_v47 = vld [vmem:[#allocation2 + $0x158] sm:$0xff]   ;;  %v2744_v22 = vld [vmem:[#allocation2 + $0x150] sm:$0xff]   ;;  %v2745_v49 = vld [vmem:[#allocation2 + $0x148] sm:$0xff]  }
 0x454   :  { %v1312_v57 = vrot.slane %v1292_v0, %v3106_v31  ;;  %v1344_v58 = vpack.i.b16 %v1308_v50, %v1308_v50  ;;  %v1358_v59 = vpack.i.b16 %v1316_v51, %v1316_v51  ;;  %v1337_v17 = vpack.i.b16 %v1304_v52, %v1304_v52  ;;  %v2746_v0 = vld [vmem:[#allocation2 + $0x140] sm:$0xff]   ;;  %v2747_v50 = vld [vmem:[#allocation2 + $0x1b8] sm:$0xff]   ;;  %v2748_v51 = vld [vmem:[#allocation2 + $0x1b0] sm:$0xff]  }
 0x455   :  { %v1320_v62 = vrot.slane %v1294_v53, %v3106_v31  ;;  %v1296_v3 = vpack.i.b16 %v1260_v55, %v1260_v55  ;;  %v1335_v5 = vrot.slane %v1330_v56, %v3106_v31  ;;  %v1324_v10 = vrot.slane %v2299_v54, %v3106_v31  ;;  %v2749_v52 = vld [vmem:[#allocation2 + $0x1a8] sm:$0xff]   ;;  %v2750_v53 = vld [vmem:[#allocation2 + $0x1a0] sm:$0xff]   ;;  %v2751_v54 = vld [vmem:[#allocation2 + $0x198] sm:$0xff]   ;;  %v1563_v56 = vpop.permute.xlu1 %1562 }
 0x456   :  { %v1349_v6 = vrot.slane %v1344_v58, %v3106_v31  ;;  %v1351_v8 = vpack.i.b16 %v1312_v57, %v1312_v57  ;;  %v1342_v11 = vrot.slane %v1337_v17, %v3106_v31  ;;  %v1363_v13 = vrot.slane %v1358_v59, %v3106_v31  ;;  %v2752_v55 = vld [vmem:[#allocation2 + $0x190] sm:$0xff]   ;;  %v2753_v57 = vld [vmem:[#allocation2 + $0x188] sm:$0xff]   ;;  %v1558_v58 = vpop.permute.xlu0 %1557 }
 0x457   :  { %v1365_v15 = vpack.i.b16 %v1320_v62, %v1320_v62  ;;  %v1328_v16 = vrot.slane %v1296_v3, %v3106_v31  ;;  %v1385_v21 = vmul.bf16 %v2340_v37, %v1335_v5  ;;  %v1372_v30 = vpack.i.b16 %v1324_v10, %v1324_v10 }
 0x458   :  { %v1356_v14 = vrot.slane %v1351_v8, %v3106_v31  ;;  %v1386_v24 = vmul.bf16 %v2341_v38, %v1342_v11  ;;  %v1387_v28 = vmul.bf16 %v2342_v40, %v1349_v6  ;;  %v1389_v34 = vmul.bf16 %v2344_v12, %v1363_v13  ;;  %v2739_v40 = vld [vmem:[#allocation2 + $0x178] sm:$0xff]  }
 0x459   :  { %v1370_v25 = vrot.slane %v1365_v15, %v3106_v31  ;;  %v1379_v27 = vpack.i.b16 %v1328_v16, %v1328_v16  ;;  %v2347_v42 = vpack.c.bf16 %v1209_v20, %v1209_v20  ;;  %v2346_v45 = vpack.c.bf16 %v1208_v26, %v1208_v26  ;;  %2557 = vmatpush3.bf16.msra.mxu0 %v2739_v40  ;;  %v1568_v59 = vpop.permute.xlu1 %1567 }
 0x45a   :  { %v1388_v29 = vmul.bf16 %v2343_v41, %v1356_v14  ;;  %v2300_v33 = vcombine.low %v1385_v21, %v1386_v24  ;;  %v1377_v37 = vrot.slane %v1372_v30, %v3106_v31  ;;  %v2740_v41 = vld [vmem:[#allocation2 + $0x170] sm:$0xff]   ;;  %2558 = vmatprep.subr.bf16.mxu0 %v2885_v7  ;;  %v1573_v60 = vpop.permute.xlu0 %1572 }
 0x45b   :  { %v1390_v35 = vmul.bf16 %v2345_v39, %v1370_v25  ;;  %v1384_v43 = vrot.slane %v1379_v27, %v3106_v31  ;;  %v2742_v31 = vld [vmem:[#allocation2 + $0x160] sm:$0xff]  }
 0x45c   :  { %v2301_v36 = vcombine.low %v1387_v28, %v1388_v29  ;;  %2548 = vmatprep.mubr.bf16.mxu1 %v2300_v33  ;;  %v1391_v19 = vmul.bf16 %v2346_v45, %v1377_v37 }
 0x45d   :  { %v2302_v44 = vcombine.low %v1389_v34, %v1390_v35  ;;  %v1392_v38 = vmul.bf16 %v2347_v42, %v1384_v43  ;;  %2559 = vmatpush3.bf16.msra.mxu0 %v2740_v41  ;;  %v1578_v3 = vpop.permute.xlu1 %1577 }
 0x45e   :  { %2549 = vmatmul.mubr.bf16.vlgmr.msra.gmra.mxu1 %v2301_v36  ;;  %2560 = vmatprep.subr.bf16.mxu0 %v2885_v7  ;;  %v1583_v15 = vpop.permute.xlu0 %1582 }
 0x45f   :  { %2552 = vmatprep.mubr.bf16.mxu1 %v2302_v44  ;;  %v2303_v32 = vcombine.low %v1391_v19, %v1392_v38  ;;  %2577 = vmatpush3.bf16.msra.mxu1 %v2747_v50 }
 0x460   :  { %2578 = vmatprep.subr.bf16.mxu1 %v2885_v7 }
 0x461   :  { %2561 = vmatpush3.bf16.msra.mxu0 %v2741_v46  ;;  %v1588_v26 = vpop.permute.xlu1 %1587 }
 0x462   :  { %2562 = vmatprep.subr.bf16.mxu0 %v2885_v7  ;;  %v1593_v45 = vpop.permute.xlu0 %1592 }
 0x463   :  { %2579 = vmatpush3.bf16.msra.mxu1 %v2748_v51 }
 0x464   :  { %2580 = vmatprep.subr.bf16.mxu1 %v2885_v7 }
 0x465   :  { %2563 = vmatpush3.bf16.msra.mxu0 %v2742_v31 }
 0x466   :  { %2553 = vmatmul.mubr.bf16.gmra.mxu1 %v2303_v32  ;;  %2564 = vmatprep.subr.bf16.mxu0 %v2885_v7 }
 0x467   :  { %2592 = vmatprep.mubr.msk.bf16.mxu1 %vm2886_vm0, %v2885_v7  ;;  %2581 = vmatpush3.bf16.msra.mxu1 %v2749_v52 }
 0x468   :  { %2582 = vmatprep.subr.bf16.mxu1 %v2885_v7 }
 0x469   :  { %2565 = vmatpush3.bf16.msra.mxu0 %v2743_v47 }
 0x46a   :  { %2566 = vmatprep.subr.bf16.mxu0 %v2885_v7 }
 0x46b   :  { %2583 = vmatpush3.bf16.msra.mxu1 %v2750_v53 }
 0x46c   :  { %2584 = vmatprep.subr.bf16.mxu1 %v2885_v7 }
 0x46d   :  { %2567 = vmatpush3.bf16.msra.mxu0 %v2744_v22 }
 0x46e   :  { %2568 = vmatprep.subr.bf16.mxu0 %v2885_v7 }
 0x46f   :  { %2585 = vmatpush3.bf16.msra.mxu1 %v2751_v54 }
 0x470   :  { %2586 = vmatprep.subr.bf16.mxu1 %v2885_v7 }
 0x471   :  { %2569 = vmatpush3.bf16.msra.mxu0 %v2745_v49 }
 0x472   :  { %2570 = vmatprep.subr.bf16.mxu0 %v2885_v7 }
 0x473   :  { %2587 = vmatpush3.bf16.msra.mxu1 %v2752_v55 }
 0x474   :  { %2588 = vmatprep.subr.bf16.mxu1 %v2885_v7 }
 0x475   :  { %2571 = vmatpush3.bf16.msra.mxu0 %v2746_v0 }
 0x476   :  { %2596 = vmatprep.subr.bf16.mxu0 %v2885_v7 }
 0x477   :  { %2589 = vmatpush3.bf16.msra.mxu1 %v2753_v57 }
 0x478   :  { %2590 = vmatprep.subr.bf16.mxu1 %v2885_v7 }
 0x51e   :  { %v2550_v17 = vpop.f32.mrf.mxu1 }
 0x51f   :  { %v1597_v62 = vadd.f32 %v2550_v17, %v1568_v59 }
 0x520   :  { %v1516_v1 = vpop.f32.mrf.mxu1 }
 0x521   :  { %v1615_v5 = vrot.slane %v1597_v62, 4  ;;  %v1595_v6 = vadd.f32 %v1558_v58, %v1516_v1 }
 0x522   :  { %v2551_v8 = vpop.f32.mrf.mxu1 }
 0x523   :  { %v1616_v10 = vmax.f32 %v1597_v62, %v1615_v5  ;;  %v1603_v11 = vrot.slane %v1595_v6, 4  ;;  %v1598_v12 = vadd.f32 %v2551_v8, %v1573_v60 }
 0x524   :  { %v1519_v13 = vpop.f32.mrf.mxu1 }
 0x525   :  { %v1617_v16 = vrot.slane %v1616_v10, 2  ;;  %v1604_v14 = vmax.f32 %v1595_v6, %v1603_v11  ;;  %v1621_v20 = vrot.slane %v1598_v12, 4  ;;  %v1596_v21 = vadd.f32 %v1563_v56, %v1519_v13 }
 0x526   :  { %v2554_v24 = vpop.f32.mrf.mxu1 }
 0x527   :  { %v1618_v39 = vmax.f32 %v1616_v10, %v1617_v16  ;;  %v1605_v25 = vrot.slane %v1604_v14, 2  ;;  %v1622_v27 = vmax.f32 %v1598_v12, %v1621_v20  ;;  %v1609_v28 = vrot.slane %v1596_v21, 4 }
 0x528   :  { %v1601_v29 = vadd.f32 %v2554_v24, %v1588_v26  ;;  %v1532_v30 = vpop.f32.mrf.mxu1 }
 0x529   :  { %v1619_v33 = vrot.slane %v1618_v39, 1  ;;  %v1606_v34 = vmax.f32 %v1604_v14, %v1605_v25  ;;  %v1623_v35 = vrot.slane %v1622_v27, 2  ;;  %v1610_v36 = vmax.f32 %v1596_v21, %v1609_v28 }
 0x52a   :  { %v1639_v42 = vrot.slane %v1601_v29, 4  ;;  %v1599_v43 = vadd.f32 %v1578_v3, %v1532_v30  ;;  %v2555_v44 = vpop.f32.mrf.mxu1 }
 0x52b   :  { %v1620_v37 = vmax.f32 %v1618_v39, %v1619_v33  ;;  %v1607_v38 = vrot.slane %v1606_v34, 1  ;;  %v1624_v19 = vmax.f32 %v1622_v27, %v1623_v35  ;;  %v1611_v32 = vrot.slane %v1610_v36, 2 }
 0x52c   :  { %v1640_v40 = vmax.f32 %v1601_v29, %v1639_v42  ;;  %v1627_v41 = vrot.slane %v1599_v43, 4  ;;  %v1602_v46 = vadd.f32 %v2555_v44, %v1593_v45  ;;  %v1535_v31 = vpop.f32.mrf.mxu1 }
 0x52d   :  { %v1653_v47 = vsub.f32 %v1597_v62, %v1620_v37  ;;  %v1608_v22 = vmax.f32 %v1606_v34, %v1607_v38  ;;  %v1625_v49 = vrot.slane %v1624_v19, 1  ;;  %v1612_v0 = vmax.f32 %v1610_v36, %v1611_v32 }
 0x52e   :  { %v1641_v50 = vrot.slane %v1640_v40, 2  ;;  %v1628_v51 = vmax.f32 %v1599_v43, %v1627_v41  ;;  %v1645_v52 = vrot.slane %v1602_v46, 4  ;;  %v1600_v53 = vadd.f32 %v1583_v15, %v1535_v31 }
 0x52f   :  { %v1663_v54 = vmul.f32 1.442695, %v1653_v47  ;;  %v1651_v55 = vsub.f32 %v1595_v6, %v1608_v22  ;;  %v1626_v56 = vmax.f32 %v1624_v19, %v1625_v49  ;;  %v1613_v57 = vrot.slane %v1612_v0, 1 }
 0x530   :  { %v1642_v58 = vmax.f32 %v1640_v40, %v1641_v50  ;;  %v1629_v59 = vrot.slane %v1628_v51, 2  ;;  %v1646_v17 = vmax.f32 %v1602_v46, %v1645_v52  ;;  %v1633_v60 = vrot.slane %v1600_v53, 4 }
 0x531   :  { %2775 = vpow2.f32 %v1663_v54  ;;  %v1659_v1 = vmul.f32 1.442695, %v1651_v55  ;;  %v1654_v3 = vsub.f32 %v1598_v12, %v1626_v56  ;;  %v1614_v5 = vmax.f32 %v1612_v0, %v1613_v57 }
 0x532   :  { %v1643_v62 = vrot.slane %v1642_v58, 1  ;;  %v1630_v8 = vmax.f32 %v1628_v51, %v1629_v59  ;;  %v1647_v10 = vrot.slane %v1646_v17, 2  ;;  %v1634_v11 = vmax.f32 %v1600_v53, %v1633_v60 }
 0x533   :  { %2777 = vpow2.f32 %v1659_v1  ;;  %v1665_v13 = vmul.f32 1.442695, %v1654_v3  ;;  %v1652_v16 = vsub.f32 %v1596_v21, %v1614_v5 }
 0x534   :  { %v1644_v15 = vmax.f32 %v1642_v58, %v1643_v62  ;;  %v1631_v14 = vrot.slane %v1630_v8, 1  ;;  %v1648_v6 = vmax.f32 %v1646_v17, %v1647_v10  ;;  %v1635_v20 = vrot.slane %v1634_v11, 2 }
 0x535   :  { %2779 = vpow2.f32 %v1665_v13  ;;  %v1661_v24 = vmul.f32 1.442695, %v1652_v16 }
 0x536   :  { %v1657_v39 = vsub.f32 %v1601_v29, %v1644_v15  ;;  %v1632_v25 = vmax.f32 %v1630_v8, %v1631_v14  ;;  %v1649_v26 = vrot.slane %v1648_v6, 1  ;;  %v1636_v27 = vmax.f32 %v1634_v11, %v1635_v20 }
 0x537   :  { %2781 = vpow2.f32 %v1661_v24 }
 0x538   :  { %v1671_v12 = vmul.f32 1.442695, %v1657_v39  ;;  %v1655_v28 = vsub.f32 %v1599_v43, %v1632_v25  ;;  %v1650_v30 = vmax.f32 %v1648_v6, %v1649_v26  ;;  %v1637_v33 = vrot.slane %v1636_v27, 1 }
 0x53a   :  { %2783 = vpow2.f32 %v1671_v12  ;;  %v1667_v34 = vmul.f32 1.442695, %v1655_v28  ;;  %v1658_v35 = vsub.f32 %v1602_v46, %v1650_v30  ;;  %v1638_v36 = vmax.f32 %v1636_v27, %v1637_v33 }
 0x53c   :  { %2785 = vpow2.f32 %v1667_v34  ;;  %v1673_v21 = vmul.f32 1.442695, %v1658_v35  ;;  %v1656_v42 = vsub.f32 %v1600_v53, %v1638_v36 }
 0x53e   :  { %v3143_v44 = vpop.eup %2775  ;;  %2787 = vpow2.f32 %v1673_v21  ;;  %v1669_v45 = vmul.f32 1.442695, %v1656_v42 }
 0x53f   :  { %v1687_v29 = vrot.slane %v3143_v44, 4 }
 0x540   :  { %v3146_v37 = vpop.eup %2777  ;;  %2789 = vpow2.f32 %v1669_v45 }
 0x541   :  { %v1688_v43 = vadd.f32 %v3143_v44, %v1687_v29  ;;  %v1675_v38 = vrot.slane %v3146_v37, 4 }
 0x542   :  { %v3150_v19 = vpop.eup %2779 }
 0x543   :  { %v1689_v32 = vrot.slane %v1688_v43, 2  ;;  %v1676_v40 = vadd.f32 %v3146_v37, %v1675_v38  ;;  %v1693_v41 = vrot.slane %v3150_v19, 4 }
 0x544   :  { %v3154_v46 = vpop.eup %2781 }
 0x545   :  { %v1690_v31 = vadd.f32 %v1689_v32, %v1688_v43  ;;  %v1677_v47 = vrot.slane %v1676_v40, 2  ;;  %v1694_v22 = vadd.f32 %v3150_v19, %v1693_v41  ;;  %v1681_v49 = vrot.slane %v3154_v46, 4  ;;  %v2287_v43 = vld [vmem:[%s3224_s6 + $0x8] ss:$0 sm:$0xff] }
 0x546   :  { %v1217_v32 = vadd.f32 %v2287_v43, %v3089_v2 }
 0x547   :  { %v3158_v0 = vpop.eup %2783  ;;  %v1691_v50 = vrot.slane %v1690_v31, 1  ;;  %v1678_v51 = vadd.f32 %v1677_v47, %v1676_v40  ;;  %v1695_v52 = vrot.slane %v1694_v22, 2  ;;  %v1682_v53 = vadd.f32 %v3154_v46, %v1681_v49 }
 0x548   :  { %v1711_v54 = vrot.slane %v3158_v0, 4 }
 0x549   :  { %v3162_v55 = vpop.eup %2785  ;;  %v1692_v56 = vadd.f32 %v1691_v50, %v1690_v31  ;;  %v1679_v57 = vrot.slane %v1678_v51, 1  ;;  %v1696_v58 = vadd.f32 %v1695_v52, %v1694_v22  ;;  %v1683_v59 = vrot.slane %v1682_v53, 2 }
 0x54a   :  { %v1712_v17 = vadd.f32 %v3158_v0, %v1711_v54  ;;  %v1699_v60 = vrot.slane %v3162_v55, 4  ;;  %v1215_v31 = vadd.f32 %v2287_v43, %v3085_v61  ;;  %v1218_v50 = vadd.f32 %v2287_v43, %v3091_v4 }
 0x54b   :  { %v3166_v1 = vpop.eup %2787  ;;  %2791 = vrcp.f32 %v1692_v56  ;;  %v1680_v3 = vadd.f32 %v1679_v57, %v1678_v51  ;;  %v1697_v5 = vrot.slane %v1696_v58, 1  ;;  %v1684_v62 = vadd.f32 %v1683_v59, %v1682_v53 }
 0x54c   :  { %v1713_v8 = vrot.slane %v1712_v17, 2  ;;  %v1700_v10 = vadd.f32 %v3162_v55, %v1699_v60  ;;  %v1717_v11 = vrot.slane %v3166_v1, 4  ;;  %v1216_v56 = vadd.f32 %v2287_v43, %v3087_v63 }
 0x54d   :  { %v3170_v13 = vpop.eup %2789  ;;  %2793 = vrcp.f32 %v1680_v3  ;;  %v1698_v16 = vadd.f32 %v1697_v5, %v1696_v58  ;;  %v1685_v15 = vrot.slane %v1684_v62, 1  ;;  %v1221_v3 = vadd.f32 %v2287_v43, %v3108_v48  ;;  %v1194_v5 = vpop.f32.mrf.mxu0 }
 0x54e   :  { %v1714_v14 = vadd.f32 %v1713_v8, %v1712_v17  ;;  %v1701_v6 = vrot.slane %v1700_v10, 2  ;;  %v1718_v20 = vadd.f32 %v3166_v1, %v1717_v11  ;;  %v1705_v24 = vrot.slane %v3170_v13, 4 }
 0x54f   :  { %2795 = vrcp.f32 %v1698_v16  ;;  %v1686_v39 = vadd.f32 %v1685_v15, %v1684_v62  ;;  %v1222_v48 = vadd.f32 %v2287_v43, %v1194_v5 }
 0x550   :  { %v1715_v25 = vrot.slane %v1714_v14, 1  ;;  %v1702_v26 = vadd.f32 %v1701_v6, %v1700_v10  ;;  %v1719_v27 = vrot.slane %v1718_v20, 2  ;;  %v1706_v12 = vadd.f32 %v3170_v13, %v1705_v24 }
 0x551   :  { %2797 = vrcp.f32 %v1686_v39 }
 0x552   :  { %v1716_v28 = vadd.f32 %v1715_v25, %v1714_v14  ;;  %v1703_v30 = vrot.slane %v1702_v26, 1  ;;  %v1720_v33 = vadd.f32 %v1719_v27, %v1718_v20  ;;  %v1707_v34 = vrot.slane %v1706_v12, 2 }
 0x553   :  { %v1220_v14 = vadd.f32 %v2287_v43, %v3104_v23 }
 0x554   :  { %v1704_v35 = vadd.f32 %v1703_v30, %v1702_v26  ;;  %v1721_v36 = vrot.slane %v1720_v33, 1  ;;  %v1708_v21 = vadd.f32 %v1707_v34, %v1706_v12  ;;  %2799 = vrcp.f32 %v1716_v28 }
 0x556   :  { %2801 = vrcp.f32 %v1704_v35  ;;  %v1709_v42 = vrot.slane %v1708_v21, 1  ;;  %v1722_v45 = vadd.f32 %v1721_v36, %v1720_v33 }
 0x558   :  { %v2792_v29 = vpop.eup %2791  ;;  %v1710_v38 = vadd.f32 %v1709_v42, %v1708_v21  ;;  %2803 = vrcp.f32 %v1722_v45 }
 0x559   :  { %v1733_v40 = vmul.f32 %v2792_v29, %v3143_v44 }
 0x55a   :  { %v2794_v41 = vpop.eup %2793  ;;  %2805 = vrcp.f32 %v1710_v38 }
 0x55b   :  { %v1731_v47 = vmul.f32 %v2794_v41, %v3146_v37  ;;  %v1741_v22 = vmul.f32 %v1733_v40, %v1217_v32 }
 0x55c   :  { %v2796_v49 = vpop.eup %2795 }
 0x55d   :  { %v1734_v51 = vmul.f32 %v2796_v49, %v3150_v19  ;;  %v1739_v52 = vmul.f32 %v1731_v47, %v1215_v31  ;;  %v1759_v53 = vrot.slane %v1741_v22, 4 }
 0x55e   :  { %v2798_v54 = vpop.eup %2797 }
 0x55f   :  { %v1732_v2 = vmul.f32 %v2798_v54, %v3154_v46  ;;  %v1742_v44 = vmul.f32 %v1734_v51, %v1218_v50  ;;  %v1747_v57 = vrot.slane %v1739_v52, 4  ;;  %v1760_v58 = vadd.f32 %v1759_v53, %v1741_v22 }
 0x560   :  { %v1219_v46 = vadd.f32 %v2287_v43, %v3093_v9 }
 0x561   :  { %v2800_v59 = vpop.eup %2799  ;;  %v1740_v61 = vmul.f32 %v1732_v2, %v1216_v56  ;;  %v1748_v17 = vadd.f32 %v1747_v57, %v1739_v52  ;;  %v1761_v37 = vrot.slane %v1760_v58, 2  ;;  %v1765_v60 = vrot.slane %v1742_v44, 4 }
 0x562   :  { %v1737_v4 = vmul.f32 %v2800_v59, %v3158_v0 }
 0x563   :  { %v2802_v19 = vpop.eup %2801  ;;  %v1749_v62 = vrot.slane %v1748_v17, 2  ;;  %v1753_v8 = vrot.slane %v1740_v61, 4  ;;  %v1762_v10 = vadd.f32 %v1761_v37, %v1760_v58  ;;  %v1766_v63 = vadd.f32 %v1765_v60, %v1742_v44 }
 0x564   :  { %v1735_v11 = vmul.f32 %v2802_v19, %v3162_v55  ;;  %v1745_v16 = vmul.f32 %v1737_v4, %v1221_v3 }
 0x565   :  { %v2804_v15 = vpop.eup %2803  ;;  %v1750_v6 = vadd.f32 %v1749_v62, %v1748_v17  ;;  %v1754_v20 = vadd.f32 %v1753_v8, %v1740_v61  ;;  %v1767_v24 = vrot.slane %v1766_v63, 2  ;;  %v1763_v28 = vrot.slane %v1762_v10, 1 }
 0x566   :  { %v1738_v0 = vmul.f32 %v2804_v15, %v3166_v1  ;;  %v1743_v39 = vmul.f32 %v1735_v11, %v1219_v46  ;;  %v1783_v25 = vrot.slane %v1745_v16, 4 }
 0x567   :  { %v2806_v26 = vpop.eup %2805  ;;  %v1751_v27 = vrot.slane %v1750_v6, 1  ;;  %v1755_v12 = vrot.slane %v1754_v20, 2  ;;  %v1768_v30 = vadd.f32 %v1767_v24, %v1766_v63  ;;  %v1764_v43 = vadd.f32 %v1763_v28, %v1762_v10 }
 0x568   :  { %v1736_v9 = vmul.f32 %v2806_v26, %v3170_v13  ;;  %v1746_v55 = vmul.f32 %v1738_v0, %v1222_v48  ;;  %v1771_v33 = vrot.slane %v1743_v39, 4  ;;  %v1784_v34 = vadd.f32 %v1783_v25, %v1745_v16  ;;  %v2754_v26 = vld [vmem:[#allocation2 + $0x180] sm:$0xff]  }
 0x569   :  { %v1752_v35 = vadd.f32 %v1751_v27, %v1750_v6  ;;  %v1756_v23 = vadd.f32 %v1755_v12, %v1754_v20  ;;  %v1769_v36 = vrot.slane %v1768_v30, 1  ;;  %v1797_v53 = vpack.c.bf16 %v1764_v43, %v1764_v43  ;;  %2591 = vmatpush3.bf16.msra.mxu1 %v2754_v26  ;;  %v2312_v27 = vld [vmem:[%s3224_s6 + $0x9] ss:$0 sm:$0xff]  ;;  %v2329_v43 = vld [vmem:[%s3224_s6 + $0xa] ss:$0 sm:$0xff] }
 0x56a   :  { %v1744_v21 = vmul.f32 %v1736_v9, %v1220_v14  ;;  %v1772_v42 = vadd.f32 %v1771_v33, %v1743_v39  ;;  %v1785_v45 = vrot.slane %v1784_v34, 2  ;;  %v1789_v29 = vrot.slane %v1746_v55, 4 }
 0x56b   :  { %v1757_v1 = vrot.slane %v1756_v23, 1  ;;  %v1770_v38 = vadd.f32 %v1769_v36, %v1768_v30  ;;  %v1795_v22 = vpack.c.bf16 %v1752_v35, %v1752_v35  ;;  %v1835_v60 = vunpack.c.l.b16 %v1797_v53  ;;  %v2756_v35 = vld [vmem:[#allocation2 + $0x1f0] sm:$0xff]   ;;  %v2758_v36 = vld [vmem:[#allocation2 + $0x1e0] sm:$0xff]  }
 0x56c   :  { %v1773_v32 = vrot.slane %v1772_v42, 2  ;;  %v1777_v40 = vrot.slane %v1744_v21, 4  ;;  %v1786_v41 = vadd.f32 %v1785_v45, %v1784_v34  ;;  %v1790_v31 = vadd.f32 %v1789_v29, %v1746_v55  ;;  %v2755_v34 = vld [vmem:[#allocation2 + $0x1f8] sm:$0xff]   ;;  %v2761_v45 = vld [vmem:[#allocation2 + $0x1c8] sm:$0xff]   ;;  %v2762_v29 = vld [vmem:[#allocation2 + $0x1c0] sm:$0xff]  }
 0x56d   :  { %v1758_v47 = vadd.f32 %v1757_v1, %v1756_v23  ;;  %v1798_v44 = vpack.c.bf16 %v1770_v38, %v1770_v38  ;;  %v1833_v57 = vunpack.c.l.b16 %v1795_v22  ;;  %v2757_v23 = vld [vmem:[#allocation2 + $0x1e8] sm:$0xff]  }
 0x56e   :  { %v1774_v13 = vadd.f32 %v1773_v32, %v1772_v42  ;;  %v1778_v49 = vadd.f32 %v1777_v40, %v1744_v21  ;;  %v1791_v50 = vrot.slane %v1790_v31, 2  ;;  %v1787_v51 = vrot.slane %v1786_v41, 1  ;;  %v2759_v21 = vld [vmem:[#allocation2 + $0x1d8] sm:$0xff]   ;;  %v2760_v42 = vld [vmem:[#allocation2 + $0x1d0] sm:$0xff]  }
 0x56f   :  { %v1796_v52 = vpack.c.bf16 %v1758_v47, %v1758_v47  ;;  %v1836_v62 = vunpack.c.l.b16 %v1798_v44 }
 0x570   :  { %v1775_v54 = vrot.slane %v1774_v13, 1  ;;  %v1779_v56 = vrot.slane %v1778_v49, 2  ;;  %v1792_v2 = vadd.f32 %v1791_v50, %v1790_v31  ;;  %v1788_v37 = vadd.f32 %v1787_v51, %v1786_v41  ;;  %v2331_v51 = vld [vmem:[%s3224_s6 + $0xb] ss:$0 sm:$0xff] }
 0x571   :  { %v1834_v58 = vunpack.c.l.b16 %v1796_v52 }
 0x572   :  { %v1776_v59 = vadd.f32 %v1775_v54, %v1774_v13  ;;  %v1780_v61 = vadd.f32 %v1779_v56, %v1778_v49  ;;  %v1793_v17 = vrot.slane %v1792_v2, 1  ;;  %v1801_v11 = vpack.c.bf16 %v1788_v37, %v1788_v37  ;;  %v2811_v54 = vld [vmem:[%s3219_s1] sm:$0xff] }
 0x573   :  { %v1842_v3 = vsel %vm1841_vm3, %v1834_v58, %v1833_v57 }
 0x574   :  { %v1781_v4 = vrot.slane %v1780_v61, 1  ;;  %v1794_v19 = vadd.f32 %v1793_v17, %v1792_v2  ;;  %v1799_v5 = vpack.c.bf16 %v1776_v59, %v1776_v59  ;;  %v1844_v8 = vsel %vm1843_vm4, %v1835_v60, %v1842_v3 }
 0x575   :  { %v1846_v46 = vsel %vm1845_vm5, %v1836_v62, %v1844_v8  ;;  %v1839_v20 = vunpack.c.l.b16 %v1801_v11 }
 0x576   :  { %v1782_v10 = vadd.f32 %v1781_v4, %v1780_v61  ;;  %v1837_v63 = vunpack.c.l.b16 %v1799_v5  ;;  %v1802_v15 = vpack.c.bf16 %v1794_v19, %v1794_v19 }
 0x578   :  { %v1800_v16 = vpack.c.bf16 %v1782_v10, %v1782_v10  ;;  %v1848_v14 = vsel %vm1847_vm6, %v1837_v63, %v1846_v46  ;;  %v1840_v24 = vunpack.c.l.b16 %v1802_v15 }
 0x57a   :  { %v1838_v6 = vunpack.c.l.b16 %v1800_v16 }
 0x57c   :  { %v1850_v48 = vsel %vm1849_vm7, %v1838_v6, %v1848_v14 }
 0x57d   :  { %v1852_v0 = vsel %vm1851_vm8, %v1839_v20, %v1850_v48 }
 0x57e   :  { %v1854_v39 = vsel %vm1853_vm9, %v1840_v24, %v1852_v0 }
 0x57f   :  { %v1855_v25 = vpack.c.b16 %v1854_v39, %v1854_v39 }
 0x581   :  { %2573 = vmatmul.mubr.bf16.vlgmr.msra.gmra.mxu0 %v1855_v25 }
 0x582   :  { %2612 = vmatprep.mubr.msk.bf16.mxu0 %vm2886_vm0, %v2885_v7  ;;  %2597 = vmatpush3.bf16.msra.mxu0 %v2755_v34 }
 0x583   :  { %2598 = vmatprep.subr.bf16.mxu0 %v2885_v7 }
 0x586   :  { %2599 = vmatpush3.bf16.msra.mxu0 %v2756_v35 }
 0x587   :  { %2600 = vmatprep.subr.bf16.mxu0 %v2885_v7 }
 0x58a   :  { %2601 = vmatpush3.bf16.msra.mxu0 %v2757_v23 }
 0x58b   :  { %2602 = vmatprep.subr.bf16.mxu0 %v2885_v7 }
 0x58e   :  { %2603 = vmatpush3.bf16.msra.mxu0 %v2758_v36 }
 0x58f   :  { %2604 = vmatprep.subr.bf16.mxu0 %v2885_v7 }
 0x592   :  { %2605 = vmatpush3.bf16.msra.mxu0 %v2759_v21 }
 0x593   :  { %2606 = vmatprep.subr.bf16.mxu0 %v2885_v7 }
 0x596   :  { %2607 = vmatpush3.bf16.msra.mxu0 %v2760_v42 }
 0x597   :  { %2608 = vmatprep.subr.bf16.mxu0 %v2885_v7 }
 0x59a   :  { %2609 = vmatpush3.bf16.msra.mxu0 %v2761_v45 }
 0x59b   :  { %2610 = vmatprep.subr.bf16.mxu0 %v2885_v7 }
 0x59e   :  { %2611 = vmatpush3.bf16.msra.mxu0 %v2762_v29 }
 0x641   :  { %v1939_v12 = vpop.f32.mrf.mxu0 }
 0x642   :  { %v1940_v28 = vadd.f32 %v2312_v27, %v1939_v12 }
 0x643   :  { %v2574_v30 = vpop.f32.mrf.mxu0 }
 0x644   :  { %v1945_v9 = vpack.c.bf16 %v1940_v28, %v1940_v28 }
 0x645   :  { %v1942_v55 = vpop.f32.mrf.mxu0 }
 0x646   :  { %2593 = vmatmul.mubr.bf16.vlgmr.msra.gmra.mxu1 %v1945_v9 }
 0x647   :  { %v2575_v33 = vpop.f32.mrf.mxu0 }
 0x706   :  { %v2045_v1 = vpop.f32.mrf.mxu1 }
 0x707   :  { %v2046_v38 = vadd.f32 %v2045_v1, %v3099_v18 }
 0x708   :  { %v2594_v32 = vpop.f32.mrf.mxu1 }
 0x709   :  { %v2056_v40 = vadd.f32 %v2329_v43, %v2046_v38 }
 0x70a   :  { %v2048_v41 = vpop.f32.mrf.mxu1 }
 0x70b   :  { %v2330_v31 = vmul.f32 -1.442695, %v2056_v40 }
 0x70c   :  { %v2595_v47 = vpop.f32.mrf.mxu1 }
 0x70d   :  { %2807 = vpow2.f32 %v2330_v31 }
 0x71a   :  { %v2808_v22 = vpop.eup %2807 }
 0x71b   :  { %v2060_v13 = vadd.f32 1.0, %v2808_v22 }
 0x71d   :  { %2809 = vrcp.f32 %v2060_v13 }
 0x72a   :  { %v2810_v49 = vpop.eup %2809 }
 0x72b   :  { %v2063_v7 = vmul.f32 %v2810_v49, %v2056_v40 }
 0x72d   :  { %v2064_v50 = vpack.c.bf16 %v2063_v7, %v2063_v7 }
 0x72f   :  { %2613 = vmatmul.mubr.bf16.vlgmr.msra.gmra.mxu0 %v2064_v50 }
 0x7ef   :  { %v2169_v52 = vpop.f32.mrf.mxu0 }
 0x7f0   :  { %v2170_v18 = vadd.f32 %v2331_v51, %v2169_v52 }
 0x7f1   :  { %v2614_v53 = vpop.f32.mrf.mxu0 }
 0x7f2   :  { %v2175_v56 = vsub.f32 %v2811_v54, %v2170_v18 }
 0x7f3   :  { %v2172_v2 = vpop.f32.mrf.mxu0 }
 0x7f4   :  { %2176 = vst [vmem:[#allocation7] sm:$0xff] %v2175_v56 }
 0x7f5   :  { %v2615_v44 = vpop.f32.mrf.mxu0 }
 0x7f6   :  { %2863 = shalt.err (!%p2860_p0)
}
 0x7f7   :  { %2186 = dma.vmem_to_hbm [thread:$0]  %s2184_s14, 128, %s3225_s7, [#allocation4]  }
 0x7f8   :  { %2876 = dma.done.wait [#allocation4], 128  }
 0x7f9   :  { %2877 = vsyncadd [#allocation4], 4294967168 }
 0x7fa   :  { %2190 = vsyncpa [#allocation3], 1 }
 0x7fb   :  { %2191 = vsyncpa [#allocation6], 1 }
 0x7fc   :  { %2192 = vsyncpa [#allocation4], 1 }

</bundles_post_ra>
